<compile_context>
chip_gen: v6e
topology: v6e:2x2x1
jax: 0.10.0
libtpu: 0.0.40
codegen_flags: <defaults>
</compile_context>

<pallas_src>
import functools

import jax
import jax.numpy as jnp
import numpy as np
from jax.experimental import pallas as pl
from jax.experimental.pallas import tpu as pltpu

EPS = 1e-5
LANE = 128


def _round_up(x, m):
    return ((x + m - 1) // m) * m


def _vmem_budget_bytes():
    cap = 64 * 1024 * 1024                       # safe fallback (v7x physical)
    try:
        cap = int(pltpu.get_tpu_info().vmem_capacity_bytes)
    except Exception:
        pass
    # leave headroom for compiler scratch; cap well below 128 MiB parts too.
    return max(32 * 1024 * 1024, min(cap - 16 * 1024 * 1024, 100 * 1024 * 1024))


VMEM_LIMIT = _vmem_budget_bytes()


def _pick_tile_m(m, kp, cpt):
    """Largest streaming tile (rows, multiple of 16 for bf16 packing) whose
    per-call working set (double-buffered patch tile + double-buffered y tile
    + resident weight + ~2 MiB headroom) fits the per-generation VMEM budget."""
    m16 = _round_up(max(m, 16), 16)
    for tm in (1024, 512, 256, 128, 64, 32, 16):
        if tm > m16:
            continue
        need = (2 * tm * kp + 2 * tm * cpt + 2 * kp * cpt) * 2 + (2 << 20)
        if need <= VMEM_LIMIT:
            return tm
    return 16


# ----------------------------- Pallas kernels ------------------------------
def conv_stats_kernel(p_ref, w_ref, y_ref, sum_ref, sq_ref):
    """Pass 1: im2col matmul for one M-tile; write the pre-BN conv output
    (bf16) and this tile's per-channel partial sum / sum-of-squares.  Partials
    are broadcast over 8 sublanes so the stats blocks stay (8,128)-aligned;
    the finalize step divides by 8.  Zero-padded rows contribute exact zeros."""
    y = jnp.dot(p_ref[...], w_ref[...], preferred_element_type=jnp.float32)
    y_ref[...] = y.astype(y_ref.dtype)
    s = jnp.sum(y, axis=0, keepdims=True)
    q = jnp.sum(y * y, axis=0, keepdims=True)
    sum_ref[...] = jnp.broadcast_to(s, sum_ref.shape)
    sq_ref[...] = jnp.broadcast_to(q, sq_ref.shape)


def bn_relu_kernel(y_ref, sc_ref, sh_ref, o_ref):
    """Pass 2 (conv1): elementwise fused BN affine + ReLU."""
    y = y_ref[...].astype(jnp.float32)
    o_ref[...] = jnp.maximum(y * sc_ref[...] + sh_ref[...], 0.0).astype(o_ref.dtype)


def bn_add_relu_kernel(y_ref, sc_ref, sh_ref, ys_ref, scs_ref, shs_ref, o_ref):
    """Pass 2 (conv2): BN affine + shortcut BN affine + residual add + ReLU."""
    y = y_ref[...].astype(jnp.float32)
    ys = ys_ref[...].astype(jnp.float32)
    out = (y * sc_ref[...] + sh_ref[...]) + (ys * scs_ref[...] + shs_ref[...])
    o_ref[...] = jnp.maximum(out, 0.0).astype(o_ref.dtype)


# --------------------------- pallas_call wrappers ----------------------------
def _stream_spec(tile_m, cols, col_block=0):
    return pl.BlockSpec((tile_m, cols), lambda i: (i, col_block))


def _resident_spec(rows, cols):
    return pl.BlockSpec((rows, cols), lambda i: (0, 0))


def conv_stats(p, w, tile_m):
    """Streamed conv matmul + per-tile partial BN stats.  M axis is 'parallel'
    (each step writes disjoint y / stats blocks), so v7x's 2 TCs share it."""
    mp, kp = p.shape
    cpt = w.shape[1]
    nt = mp // tile_m
    return pl.pallas_call(
        conv_stats_kernel,
        out_shape=(jax.ShapeDtypeStruct((mp, cpt), jnp.bfloat16),
                   jax.ShapeDtypeStruct((nt * 8, cpt), jnp.float32),
                   jax.ShapeDtypeStruct((nt * 8, cpt), jnp.float32)),
        grid=(nt,),
        in_specs=[_stream_spec(tile_m, kp),
                  _resident_spec(kp, cpt)],
        out_specs=(_stream_spec(tile_m, cpt),
                   pl.BlockSpec((8, cpt), lambda i: (i, 0)),
                   pl.BlockSpec((8, cpt), lambda i: (i, 0))),
        compiler_params=pltpu.CompilerParams(
            dimension_semantics=("parallel",),
            vmem_limit_bytes=VMEM_LIMIT),
    )(p, w)


def bn_finalize(sum8, sq8, g, b, m_real):
    """Tiny XLA reduce over the (num_tiles*8, C) partials -> fused BN
    scale/shift (training-mode batch stats, biased variance, eps=1e-5)."""
    s = jnp.sum(sum8, axis=0) / 8.0
    q = jnp.sum(sq8, axis=0) / 8.0
    mean = s / m_real
    var = jnp.maximum(q / m_real - mean * mean, 0.0)   # guard cancellation
    scale = g.reshape(-1) * jax.lax.rsqrt(var + EPS)
    shift = b.reshape(-1) - mean * scale
    return scale.reshape(1, -1), shift.reshape(1, -1)


def bn_relu_apply(y, scale, shift, tile_m, cp, col_block=0):
    mp = y.shape[0]
    return pl.pallas_call(
        bn_relu_kernel,
        out_shape=jax.ShapeDtypeStruct((mp, cp), jnp.bfloat16),
        grid=(mp // tile_m,),
        in_specs=[_stream_spec(tile_m, cp, col_block),
                  _resident_spec(1, cp), _resident_spec(1, cp)],
        out_specs=_stream_spec(tile_m, cp),
        compiler_params=pltpu.CompilerParams(
            dimension_semantics=("parallel",),
            vmem_limit_bytes=VMEM_LIMIT),
    )(y, scale, shift)


def bn_add_relu_apply(y, scale, shift, ys, scale_s, shift_s, tile_m, cp,
                      ys_col_block=0):
    mp = y.shape[0]
    return pl.pallas_call(
        bn_add_relu_kernel,
        out_shape=jax.ShapeDtypeStruct((mp, cp), jnp.bfloat16),
        grid=(mp // tile_m,),
        in_specs=[_stream_spec(tile_m, cp),
                  _resident_spec(1, cp), _resident_spec(1, cp),
                  _stream_spec(tile_m, cp, ys_col_block),
                  _resident_spec(1, cp), _resident_spec(1, cp)],
        out_specs=_stream_spec(tile_m, cp),
        compiler_params=pltpu.CompilerParams(
            dimension_semantics=("parallel",),
            vmem_limit_bytes=VMEM_LIMIT),
    )(y, scale, shift, ys, scale_s, shift_s)


# ------------------------------ JAX glue ------------------------------------
def _im2col(x_nhwc, kh, kw, stride, pad):
    # TODO(synk): replace with halo-tile shifted-matmul inside the conv kernel
    # to avoid this 9x HBM materialization.
    x = jnp.pad(x_nhwc, ((0, 0), (pad, pad), (pad, pad), (0, 0)))
    n, hp, wp, c = x.shape
    ho = (hp - kh) // stride + 1
    wo = (wp - kw) // stride + 1
    cols = []
    for dy in range(kh):
        for dx in range(kw):
            cols.append(x[:, dy:dy + ho * stride:stride,
                          dx:dx + wo * stride:stride, :])
    p = jnp.stack(cols, axis=3)                      # (N, Ho, Wo, kh*kw, C)
    return p.reshape(n * ho * wo, kh * kw * c), (ho, wo)


def _pad2d(a, rows, cols, dtype):
    a = a.astype(dtype)                              # cast first (fused pad+cast)
    return jnp.pad(a, ((0, rows - a.shape[0]), (0, cols - a.shape[1])))


def _pad_vec(v, cols):
    return jnp.pad(v.astype(jnp.float32), (0, cols - v.shape[0])).reshape(1, cols)


def _reshape_conv_weight(w_oihw):
    # (Cout, Cin, kh, kw) -> (kh*kw*Cin, Cout), matching im2col patch ordering.
    cout, cin, kh, kw = w_oihw.shape
    return jnp.transpose(w_oihw, (2, 3, 1, 0)).reshape(kh * kw * cin, cout)


def _embed_1x1_center_tap(ws_oi11, cin, kk=3):
    # A 1x1/pad-0/stride-s projection reads exactly the centre tap of conv1's
    # 3x3/pad-1/stride-s im2col patches, so it can share conv1's matmul: place
    # its weight in the centre-tap K-rows of a (kk*kk*cin, cout) weight.
    cout = ws_oi11.shape[0]
    w = ws_oi11.reshape(cout, cin).T                 # (cin, cout)
    full = jnp.zeros((kk * kk * cin, cout), w.dtype)
    center = (kk // 2) * kk + (kk // 2)
    return full.at[center * cin:(center + 1) * cin, :].set(w)


@functools.partial(jax.jit, static_argnames=("stride", "tile_m"))
def resnet_block_pallas(x_nchw, params, stride, tile_m=None):
    # x: (N, Cin, H, W) float32  ->  (N, Cout, Ho, Wo) float32
    x = jnp.transpose(x_nchw, (0, 2, 3, 1)).astype(jnp.bfloat16)   # NHWC bf16
    n, h, w, cin = x.shape
    cout = params["w1"].shape[0]
    cp = _round_up(cout, LANE)
    has_proj = (stride != 1) or (cin != cout)

    # ------ conv1 (3x3, stride, pad 1) [+ fused 1x1 projection shortcut] -----
    p1, (ho, wo) = _im2col(x, 3, 3, stride, 1)
    m = n * ho * wo
    kp1 = _round_up(p1.shape[1], LANE)
    kp2 = _round_up(9 * cout, LANE)
    cpt1 = 2 * cp if has_proj else cp

    tm = _pick_tile_m(m, max(kp1, kp2), cpt1)
    if tile_m is not None:
        tm = min(tm, _round_up(tile_m, 16))
    mp = _round_up(m, tm)

    p1p = _pad2d(p1, mp, kp1, jnp.bfloat16)
    w1 = _pad2d(_reshape_conv_weight(params["w1"]), kp1, cp, jnp.bfloat16)
    g1, b1 = _pad_vec(params["g1"], cp), _pad_vec(params["b1"], cp)
    if has_proj:
        wsp = _pad2d(_embed_1x1_center_tap(params["ws"], cin), kp1, cp,
                     jnp.bfloat16)
        w1 = jnp.concatenate([w1, wsp], axis=1)            # (kp1, 2*cp)
        g1 = jnp.concatenate([g1, _pad_vec(params["gs"], cp)], axis=1)
        b1 = jnp.concatenate([b1, _pad_vec(params["bs"], cp)], axis=1)

    y1, s1, q1 = conv_stats(p1p, w1, tm)                    # y1: (mp, cpt1) bf16
    sc1, sh1 = bn_finalize(s1, q1, g1, b1, m)               # (1, cpt1)

    # conv1 BN + ReLU (elementwise; reads only the first cp columns of y1)
    o1 = bn_relu_apply(y1, sc1[:, :cp], sh1[:, :cp], tm, cp, col_block=0)
    o1_nhwc = o1[:m, :cout].reshape(n, ho, wo, cout)        # bf16

    # ------------------------------ shortcut ---------------------------------
    if has_proj:
        ys, ys_col = y1, 1                                  # columns [cp, 2cp)
        scs, shs = sc1[:, cp:], sh1[:, cp:]
    else:
        # TODO(synk): for real stages (cin % 128 == 0) stream x directly and
        # skip this pad copy.
        ys = _pad2d(x.reshape(m, cin), mp, cp, jnp.bfloat16)
        ys_col = 0
        scs = jnp.ones((1, cp), jnp.float32)
        shs = jnp.zeros((1, cp), jnp.float32)

    # ------------- conv2 (3x3, stride 1, pad 1) + bn2 + add + relu -----------
    p2, _ = _im2col(o1_nhwc, 3, 3, 1, 1)
    p2p = _pad2d(p2, mp, kp2, jnp.bfloat16)
    w2 = _pad2d(_reshape_conv_weight(params["w2"]), kp2, cp, jnp.bfloat16)
    g2, b2 = _pad_vec(params["g2"], cp), _pad_vec(params["b2"], cp)

    y2, s2, q2 = conv_stats(p2p, w2, tm)
    sc2, sh2 = bn_finalize(s2, q2, g2, b2, m)

    out = bn_add_relu_apply(y2, sc2, sh2, ys, scs, shs, tm, cp,
                            ys_col_block=ys_col)            # (mp, cp) bf16
    out = out[:m, :cout].reshape(n, ho, wo, cout)
    return jnp.transpose(out, (0, 3, 1, 2)).astype(jnp.float32)


# --------------------------- pure-JAX reference ------------------------------
def _conv_ref(x_nchw, w, stride, pad):
    return jax.lax.conv_general_dilated(
        x_nchw, w, (stride, stride), ((pad, pad), (pad, pad)),
        dimension_numbers=("NCHW", "OIHW", "NCHW"),
        precision=jax.lax.Precision.HIGHEST)


def _bn_ref(y, g, b):
    mean = y.mean(axis=(0, 2, 3), keepdims=True)
    var = ((y - mean) ** 2).mean(axis=(0, 2, 3), keepdims=True)
    return (y - mean) / jnp.sqrt(var + EPS) * g.reshape(1, -1, 1, 1) \
        + b.reshape(1, -1, 1, 1)


def resnet_block_ref(x, params, stride):
    out = jax.nn.relu(_bn_ref(_conv_ref(x, params["w1"], stride, 1),
                              params["g1"], params["b1"]))
    out = _bn_ref(_conv_ref(out, params["w2"], 1, 1),
                  params["g2"], params["b2"])
    if "ws" in params:
        sc = _bn_ref(_conv_ref(x, params["ws"], stride, 0),
                     params["gs"], params["bs"])
    else:
        sc = x
    return jax.nn.relu(out + sc)


def init_params(key, cin, cout, stride):
    ks = jax.random.split(key, 8)
    p = {
        "w1": 0.1 * jax.random.normal(ks[0], (cout, cin, 3, 3), jnp.float32),
        "g1": 1.0 + 0.1 * jax.random.normal(ks[1], (cout,), jnp.float32),
        "b1": 0.1 * jax.random.normal(ks[2], (cout,), jnp.float32),
        "w2": 0.1 * jax.random.normal(ks[3], (cout, cout, 3, 3), jnp.float32),
        "g2": 1.0 + 0.1 * jax.random.normal(ks[4], (cout,), jnp.float32),
        "b2": 0.1 * jax.random.normal(ks[5], (cout,), jnp.float32),
    }
    if stride != 1 or cin != cout:
        p["ws"] = 0.1 * jax.random.normal(ks[6], (cout, cin, 1, 1), jnp.float32)
        p["gs"] = 1.0 + 0.1 * jax.random.normal(ks[7], (cout,), jnp.float32)
        p["bs"] = jnp.zeros((cout,), jnp.float32)
    return p


# --------------------------------- main --------------------------------------
if __name__ == "__main__":
    key = jax.random.PRNGKey(0)
    kx, kpa, kpb = jax.random.split(key, 3)

    x = jax.random.normal(kx, (2, 4, 16, 16), jnp.float32)
    # tolerance reflects the accepted bf16 streaming contract (patches/weights/
    # intermediates/pre-BN y in bf16, f32 accumulation).
    RTOL = ATOL = 3e-2

    # case 1: projection shortcut (stride=2, channel change), fused into conv1
    params1 = init_params(kpa, cin=4, cout=8, stride=2)
    y1 = jax.block_until_ready(resnet_block_pallas(x, params1, stride=2))
    r1 = resnet_block_ref(x, params1, 2)
    assert y1.shape == (2, 8, 8, 8)
    np.testing.assert_allclose(np.asarray(y1), np.asarray(r1),
                               rtol=RTOL, atol=ATOL)

    # same case with a forced small tile -> multi-step grid exercising the
    # per-tile partial-stats reduction with the fused projection columns.
    y1b = jax.block_until_ready(
        resnet_block_pallas(x, params1, stride=2, tile_m=64))
    np.testing.assert_allclose(np.asarray(y1b), np.asarray(r1),
                               rtol=RTOL, atol=ATOL)

    # case 2: identity shortcut (stride=1, same channels)
    params2 = init_params(kpb, cin=4, cout=4, stride=1)
    y2 = jax.block_until_ready(resnet_block_pallas(x, params2, stride=1))
    r2 = resnet_block_ref(x, params2, 1)
    assert y2.shape == (2, 4, 16, 16)
    np.testing.assert_allclose(np.asarray(y2), np.asarray(r2),
                               rtol=RTOL, atol=ATOL)

    # identity case with a 4-step M grid (M=512, tile=128): cross-tile stats
    # plus streamed elementwise apply passes.
    y2b = jax.block_until_ready(
        resnet_block_pallas(x, params2, stride=1, tile_m=128))
    np.testing.assert_allclose(np.asarray(y2b), np.asarray(r2),
                               rtol=RTOL, atol=ATOL)

    print("KERNEL_OK")
</pallas_src>

<mosaic_0001>
module attributes {stable_mosaic.version = 11 : i64} {
  func.func @conv_stats_kernel(%arg0: i32, %arg1: memref<128x128xbf16, #tpu.memory_space<vmem>>, %arg2: memref<128x256xbf16, #tpu.memory_space<vmem>>, %arg3: memref<128x256xbf16, #tpu.memory_space<vmem>>, %arg4: memref<8x256xf32, #tpu.memory_space<vmem>>, %arg5: memref<8x256xf32, #tpu.memory_space<vmem>>) attributes {dimension_semantics = [#tpu.dimension_semantics<parallel>], iteration_bounds = array<i64: 1>, scalar_prefetch = 0 : i64, scratch_operands = 0 : i64, tpu.core_type = #tpu.core_type<tc>, window_params = [{transform_indices = @transform_0, window_bounds = array<i64: 128, 128>}, {pipeline_mode = #tpu.pipeline_mode<synchronous>, transform_indices = @transform_1, window_bounds = array<i64: 128, 256>}, {transform_indices = @transform_2, window_bounds = array<i64: 128, 256>}, {transform_indices = @transform_3, window_bounds = array<i64: 8, 256>}, {transform_indices = @transform_4, window_bounds = array<i64: 8, 256>}]} {
    %c0 = arith.constant 0 : index
    %c0_0 = arith.constant 0 : index
    %0 = vector.load %arg1[%c0, %c0_0] : memref<128x128xbf16, #tpu.memory_space<vmem>>, vector<128x128xbf16>
    %c0_1 = arith.constant 0 : index
    %c0_2 = arith.constant 0 : index
    %1 = vector.load %arg2[%c0_1, %c0_2] : memref<128x256xbf16, #tpu.memory_space<vmem>>, vector<128x256xbf16>
    %cst = arith.constant dense<0.000000e+00> : vector<128x256xf32>
    %2 = tpu.matmul %0, %1, %cst {dimension_numbers = #tpu.dot_dimension_numbers<[1], [0], [0], [1], [0, 0, 1, 1], [], []>} : vector<128x128xbf16>, vector<128x256xbf16>, vector<128x256xf32> -> vector<128x256xf32>
    %3 = arith.truncf %2 : vector<128x256xf32> to vector<128x256xbf16>
    %c0_3 = arith.constant 0 : index
    %c0_4 = arith.constant 0 : index
    %4 = vector.load %arg3[%c0_3, %c0_4] : memref<128x256xbf16, #tpu.memory_space<vmem>>, vector<128x256xbf16>
    tpu.vector_store %arg3[%c0_3, %c0_4], %3 {strides = array<i32>} : memref<128x256xbf16, #tpu.memory_space<vmem>>, vector<128x256xbf16>,
    %cst_5 = arith.constant dense<0.000000e+00> : vector<256xf32>
    %5 = vector.multi_reduction <add>, %2, %cst_5 [0] : vector<128x256xf32> to vector<256xf32>
    %6 = vector.shape_cast %5 : vector<256xf32> to vector<1x256xf32>
    %7 = arith.mulf %2, %2 : vector<128x256xf32>
    %cst_6 = arith.constant dense<0.000000e+00> : vector<256xf32>
    %8 = vector.multi_reduction <add>, %7, %cst_6 [0] : vector<128x256xf32> to vector<256xf32>
    %9 = vector.shape_cast %8 : vector<256xf32> to vector<1x256xf32>
    %10 = vector.shape_cast %6 : vector<1x256xf32> to vector<1x256xf32>
    %11 = vector.broadcast %10 : vector<1x256xf32> to vector<8x256xf32>
    %c0_7 = arith.constant 0 : index
    %c0_8 = arith.constant 0 : index
    %12 = vector.load %arg4[%c0_7, %c0_8] : memref<8x256xf32, #tpu.memory_space<vmem>>, vector<8x256xf32>
    tpu.vector_store %arg4[%c0_7, %c0_8], %11 {strides = array<i32>} : memref<8x256xf32, #tpu.memory_space<vmem>>, vector<8x256xf32>,
    %13 = vector.shape_cast %9 : vector<1x256xf32> to vector<1x256xf32>
    %14 = vector.broadcast %13 : vector<1x256xf32> to vector<8x256xf32>
    %c0_9 = arith.constant 0 : index
    %c0_10 = arith.constant 0 : index
    %15 = vector.load %arg5[%c0_9, %c0_10] : memref<8x256xf32, #tpu.memory_space<vmem>>, vector<8x256xf32>
    tpu.vector_store %arg5[%c0_9, %c0_10], %14 {strides = array<i32>} : memref<8x256xf32, #tpu.memory_space<vmem>>, vector<8x256xf32>,
    return
  }
  func.func @transform_0(%arg0: i32) -> (i32, i32) {
    %c0_i32 = arith.constant 0 : i32
    %c0_i32_0 = arith.constant 0 : i32
    return %arg0, %c0_i32 : i32, i32
  }
  func.func @transform_1(%arg0: i32) -> (i32, i32) {
    %c0_i32 = arith.constant 0 : i32
    %c0_i32_0 = arith.constant 0 : i32
    %c0_i32_1 = arith.constant 0 : i32
    return %c0_i32, %c0_i32_0 : i32, i32
  }
  func.func @transform_2(%arg0: i32) -> (i32, i32) {
    %c0_i32 = arith.constant 0 : i32
    %c0_i32_0 = arith.constant 0 : i32
    return %arg0, %c0_i32 : i32, i32
  }
  func.func @transform_3(%arg0: i32) -> (i32, i32) {
    %c0_i32 = arith.constant 0 : i32
    %c0_i32_0 = arith.constant 0 : i32
    return %arg0, %c0_i32 : i32, i32
  }
  func.func @transform_4(%arg0: i32) -> (i32, i32) {
    %c0_i32 = arith.constant 0 : i32
    %c0_i32_0 = arith.constant 0 : i32
    return %arg0, %c0_i32 : i32, i32
  }
}

module attributes {stable_mosaic.version = 11 : i64} {
  func.func @bn_relu_kernel(%arg0: i32, %arg1: memref<128x128xbf16, #tpu.memory_space<vmem>>, %arg2: memref<1x128xf32, #tpu.memory_space<vmem>>, %arg3: memref<1x128xf32, #tpu.memory_space<vmem>>, %arg4: memref<128x128xbf16, #tpu.memory_space<vmem>>) attributes {dimension_semantics = [#tpu.dimension_semantics<parallel>], iteration_bounds = array<i64: 1>, scalar_prefetch = 0 : i64, scratch_operands = 0 : i64, tpu.core_type = #tpu.core_type<tc>, window_params = [{transform_indices = @transform_0, window_bounds = array<i64: 128, 128>}, {pipeline_mode = #tpu.pipeline_mode<synchronous>, transform_indices = @transform_1, window_bounds = array<i64: 1, 128>}, {pipeline_mode = #tpu.pipeline_mode<synchronous>, transform_indices = @transform_2, window_bounds = array<i64: 1, 128>}, {transform_indices = @transform_3, window_bounds = array<i64: 128, 128>}]} {
    %c0 = arith.constant 0 : index
    %c0_0 = arith.constant 0 : index
    %0 = vector.load %arg1[%c0, %c0_0] : memref<128x128xbf16, #tpu.memory_space<vmem>>, vector<128x128xbf16>
    %1 = arith.extf %0 : vector<128x128xbf16> to vector<128x128xf32>
    %c0_1 = arith.constant 0 : index
    %c0_2 = arith.constant 0 : index
    %2 = vector.load %arg2[%c0_1, %c0_2] : memref<1x128xf32, #tpu.memory_space<vmem>>, vector<1x128xf32>
    %3 = vector.broadcast %2 : vector<1x128xf32> to vector<128x128xf32>
    %4 = arith.mulf %1, %3 : vector<128x128xf32>
    %c0_3 = arith.constant 0 : index
    %c0_4 = arith.constant 0 : index
    %5 = vector.load %arg3[%c0_3, %c0_4] : memref<1x128xf32, #tpu.memory_space<vmem>>, vector<1x128xf32>
    %6 = vector.broadcast %5 : vector<1x128xf32> to vector<128x128xf32>
    %7 = arith.addf %4, %6 : vector<128x128xf32>
    %cst = arith.constant 0.000000e+00 : f32
    %8 = vector.broadcast %cst : f32 to vector<128x128xf32>
    %9 = arith.maximumf %7, %8 : vector<128x128xf32>
    %10 = arith.truncf %9 : vector<128x128xf32> to vector<128x128xbf16>
    %c0_5 = arith.constant 0 : index
    %c0_6 = arith.constant 0 : index
    %11 = vector.load %arg4[%c0_5, %c0_6] : memref<128x128xbf16, #tpu.memory_space<vmem>>, vector<128x128xbf16>
    tpu.vector_store %arg4[%c0_5, %c0_6], %10 {strides = array<i32>} : memref<128x128xbf16, #tpu.memory_space<vmem>>, vector<128x128xbf16>,
    return
  }
  func.func @transform_0(%arg0: i32) -> (i32, i32) {
    %c0_i32 = arith.constant 0 : i32
    %c0_i32_0 = arith.constant 0 : i32
    return %arg0, %c0_i32 : i32, i32
  }
  func.func @transform_1(%arg0: i32) -> (i32, i32) {
    %c0_i32 = arith.constant 0 : i32
    %c0_i32_0 = arith.constant 0 : i32
    %c0_i32_1 = arith.constant 0 : i32
    return %c0_i32, %c0_i32_0 : i32, i32
  }
  func.func @transform_2(%arg0: i32) -> (i32, i32) {
    %c0_i32 = arith.constant 0 : i32
    %c0_i32_0 = arith.constant 0 : i32
    %c0_i32_1 = arith.constant 0 : i32
    return %c0_i32, %c0_i32_0 : i32, i32
  }
  func.func @transform_3(%arg0: i32) -> (i32, i32) {
    %c0_i32 = arith.constant 0 : i32
    %c0_i32_0 = arith.constant 0 : i32
    return %arg0, %c0_i32 : i32, i32
  }
}

module attributes {stable_mosaic.version = 11 : i64} {
  func.func @conv_stats_kernel(%arg0: i32, %arg1: memref<128x128xbf16, #tpu.memory_space<vmem>>, %arg2: memref<128x128xbf16, #tpu.memory_space<vmem>>, %arg3: memref<128x128xbf16, #tpu.memory_space<vmem>>, %arg4: memref<8x128xf32, #tpu.memory_space<vmem>>, %arg5: memref<8x128xf32, #tpu.memory_space<vmem>>) attributes {dimension_semantics = [#tpu.dimension_semantics<parallel>], iteration_bounds = array<i64: 1>, scalar_prefetch = 0 : i64, scratch_operands = 0 : i64, tpu.core_type = #tpu.core_type<tc>, window_params = [{transform_indices = @transform_0, window_bounds = array<i64: 128, 128>}, {pipeline_mode = #tpu.pipeline_mode<synchronous>, transform_indices = @transform_1, window_bounds = array<i64: 128, 128>}, {transform_indices = @transform_2, window_bounds = array<i64: 128, 128>}, {transform_indices = @transform_3, window_bounds = array<i64: 8, 128>}, {transform_indices = @transform_4, window_bounds = array<i64: 8, 128>}]} {
    %c0 = arith.constant 0 : index
    %c0_0 = arith.constant 0 : index
    %0 = vector.load %arg1[%c0, %c0_0] : memref<128x128xbf16, #tpu.memory_space<vmem>>, vector<128x128xbf16>
    %c0_1 = arith.constant 0 : index
    %c0_2 = arith.constant 0 : index
    %1 = vector.load %arg2[%c0_1, %c0_2] : memref<128x128xbf16, #tpu.memory_space<vmem>>, vector<128x128xbf16>
    %cst = arith.constant dense<0.000000e+00> : vector<128x128xf32>
    %2 = tpu.matmul %0, %1, %cst {dimension_numbers = #tpu.dot_dimension_numbers<[1], [0], [0], [1], [0, 0, 1, 1], [], []>} : vector<128x128xbf16>, vector<128x128xbf16>, vector<128x128xf32> -> vector<128x128xf32>
    %3 = arith.truncf %2 : vector<128x128xf32> to vector<128x128xbf16>
    %c0_3 = arith.constant 0 : index
    %c0_4 = arith.constant 0 : index
    %4 = vector.load %arg3[%c0_3, %c0_4] : memref<128x128xbf16, #tpu.memory_space<vmem>>, vector<128x128xbf16>
    tpu.vector_store %arg3[%c0_3, %c0_4], %3 {strides = array<i32>} : memref<128x128xbf16, #tpu.memory_space<vmem>>, vector<128x128xbf16>,
    %cst_5 = arith.constant dense<0.000000e+00> : vector<128xf32>
    %5 = vector.multi_reduction <add>, %2, %cst_5 [0] : vector<128x128xf32> to vector<128xf32>
    %6 = vector.shape_cast %5 : vector<128xf32> to vector<1x128xf32>
    %7 = arith.mulf %2, %2 : vector<128x128xf32>
    %cst_6 = arith.constant dense<0.000000e+00> : vector<128xf32>
    %8 = vector.multi_reduction <add>, %7, %cst_6 [0] : vector<128x128xf32> to vector<128xf32>
    %9 = vector.shape_cast %8 : vector<128xf32> to vector<1x128xf32>
    %10 = vector.shape_cast %6 : vector<1x128xf32> to vector<1x128xf32>
    %11 = vector.broadcast %10 : vector<1x128xf32> to vector<8x128xf32>
    %c0_7 = arith.constant 0 : index
    %c0_8 = arith.constant 0 : index
    %12 = vector.load %arg4[%c0_7, %c0_8] : memref<8x128xf32, #tpu.memory_space<vmem>>, vector<8x128xf32>
    tpu.vector_store %arg4[%c0_7, %c0_8], %11 {strides = array<i32>} : memref<8x128xf32, #tpu.memory_space<vmem>>, vector<8x128xf32>,
    %13 = vector.shape_cast %9 : vector<1x128xf32> to vector<1x128xf32>
    %14 = vector.broadcast %13 : vector<1x128xf32> to vector<8x128xf32>
    %c0_9 = arith.constant 0 : index
    %c0_10 = arith.constant 0 : index
    %15 = vector.load %arg5[%c0_9, %c0_10] : memref<8x128xf32, #tpu.memory_space<vmem>>, vector<8x128xf32>
    tpu.vector_store %arg5[%c0_9, %c0_10], %14 {strides = array<i32>} : memref<8x128xf32, #tpu.memory_space<vmem>>, vector<8x128xf32>,
    return
  }
  func.func @transform_0(%arg0: i32) -> (i32, i32) {
    %c0_i32 = arith.constant 0 : i32
    %c0_i32_0 = arith.constant 0 : i32
    return %arg0, %c0_i32 : i32, i32
  }
  func.func @transform_1(%arg0: i32) -> (i32, i32) {
    %c0_i32 = arith.constant 0 : i32
    %c0_i32_0 = arith.constant 0 : i32
    %c0_i32_1 = arith.constant 0 : i32
    return %c0_i32, %c0_i32_0 : i32, i32
  }
  func.func @transform_2(%arg0: i32) -> (i32, i32) {
    %c0_i32 = arith.constant 0 : i32
    %c0_i32_0 = arith.constant 0 : i32
    return %arg0, %c0_i32 : i32, i32
  }
  func.func @transform_3(%arg0: i32) -> (i32, i32) {
    %c0_i32 = arith.constant 0 : i32
    %c0_i32_0 = arith.constant 0 : i32
    return %arg0, %c0_i32 : i32, i32
  }
  func.func @transform_4(%arg0: i32) -> (i32, i32) {
    %c0_i32 = arith.constant 0 : i32
    %c0_i32_0 = arith.constant 0 : i32
    return %arg0, %c0_i32 : i32, i32
  }
}

module attributes {stable_mosaic.version = 11 : i64} {
  func.func @bn_add_relu_kernel(%arg0: i32, %arg1: memref<128x128xbf16, #tpu.memory_space<vmem>>, %arg2: memref<1x128xf32, #tpu.memory_space<vmem>>, %arg3: memref<1x128xf32, #tpu.memory_space<vmem>>, %arg4: memref<128x128xbf16, #tpu.memory_space<vmem>>, %arg5: memref<1x128xf32, #tpu.memory_space<vmem>>, %arg6: memref<1x128xf32, #tpu.memory_space<vmem>>, %arg7: memref<128x128xbf16, #tpu.memory_space<vmem>>) attributes {dimension_semantics = [#tpu.dimension_semantics<parallel>], iteration_bounds = array<i64: 1>, scalar_prefetch = 0 : i64, scratch_operands = 0 : i64, tpu.core_type = #tpu.core_type<tc>, window_params = [{transform_indices = @transform_0, window_bounds = array<i64: 128, 128>}, {pipeline_mode = #tpu.pipeline_mode<synchronous>, transform_indices = @transform_1, window_bounds = array<i64: 1, 128>}, {pipeline_mode = #tpu.pipeline_mode<synchronous>, transform_indices = @transform_2, window_bounds = array<i64: 1, 128>}, {transform_indices = @transform_3, window_bounds = array<i64: 128, 128>}, {pipeline_mode = #tpu.pipeline_mode<synchronous>, transform_indices = @transform_4, window_bounds = array<i64: 1, 128>}, {pipeline_mode = #tpu.pipeline_mode<synchronous>, transform_indices = @transform_5, window_bounds = array<i64: 1, 128>}, {transform_indices = @transform_6, window_bounds = array<i64: 128, 128>}]} {
    %c0 = arith.constant 0 : index
    %c0_0 = arith.constant 0 : index
    %0 = vector.load %arg1[%c0, %c0_0] : memref<128x128xbf16, #tpu.memory_space<vmem>>, vector<128x128xbf16>
    %1 = arith.extf %0 : vector<128x128xbf16> to vector<128x128xf32>
    %c0_1 = arith.constant 0 : index
    %c0_2 = arith.constant 0 : index
    %2 = vector.load %arg4[%c0_1, %c0_2] : memref<128x128xbf16, #tpu.memory_space<vmem>>, vector<128x128xbf16>
    %3 = arith.extf %2 : vector<128x128xbf16> to vector<128x128xf32>
    %c0_3 = arith.constant 0 : index
    %c0_4 = arith.constant 0 : index
    %4 = vector.load %arg2[%c0_3, %c0_4] : memref<1x128xf32, #tpu.memory_space<vmem>>, vector<1x128xf32>
    %5 = vector.broadcast %4 : vector<1x128xf32> to vector<128x128xf32>
    %6 = arith.mulf %1, %5 : vector<128x128xf32>
    %c0_5 = arith.constant 0 : index
    %c0_6 = arith.constant 0 : index
    %7 = vector.load %arg3[%c0_5, %c0_6] : memref<1x128xf32, #tpu.memory_space<vmem>>, vector<1x128xf32>
    %8 = vector.broadcast %7 : vector<1x128xf32> to vector<128x128xf32>
    %9 = arith.addf %6, %8 : vector<128x128xf32>
    %c0_7 = arith.constant 0 : index
    %c0_8 = arith.constant 0 : index
    %10 = vector.load %arg5[%c0_7, %c0_8] : memref<1x128xf32, #tpu.memory_space<vmem>>, vector<1x128xf32>
    %11 = vector.broadcast %10 : vector<1x128xf32> to vector<128x128xf32>
    %12 = arith.mulf %3, %11 : vector<128x128xf32>
    %c0_9 = arith.constant 0 : index
    %c0_10 = arith.constant 0 : index
    %13 = vector.load %arg6[%c0_9, %c0_10] : memref<1x128xf32, #tpu.memory_space<vmem>>, vector<1x128xf32>
    %14 = vector.broadcast %13 : vector<1x128xf32> to vector<128x128xf32>
    %15 = arith.addf %12, %14 : vector<128x128xf32>
    %16 = arith.addf %9, %15 : vector<128x128xf32>
    %cst = arith.constant 0.000000e+00 : f32
    %17 = vector.broadcast %cst : f32 to vector<128x128xf32>
    %18 = arith.maximumf %16, %17 : vector<128x128xf32>
    %19 = arith.truncf %18 : vector<128x128xf32> to vector<128x128xbf16>
    %c0_11 = arith.constant 0 : index
    %c0_12 = arith.constant 0 : index
    %20 = vector.load %arg7[%c0_11, %c0_12] : memref<128x128xbf16, #tpu.memory_space<vmem>>, vector<128x128xbf16>
    tpu.vector_store %arg7[%c0_11, %c0_12], %19 {strides = array<i32>} : memref<128x128xbf16, #tpu.memory_space<vmem>>, vector<128x128xbf16>,
    return
  }
  func.func @transform_0(%arg0: i32) -> (i32, i32) {
    %c0_i32 = arith.constant 0 : i32
    %c0_i32_0 = arith.constant 0 : i32
    return %arg0, %c0_i32 : i32, i32
  }
  func.func @transform_1(%arg0: i32) -> (i32, i32) {
    %c0_i32 = arith.constant 0 : i32
    %c0_i32_0 = arith.constant 0 : i32
    %c0_i32_1 = arith.constant 0 : i32
    return %c0_i32, %c0_i32_0 : i32, i32
  }
  func.func @transform_2(%arg0: i32) -> (i32, i32) {
    %c0_i32 = arith.constant 0 : i32
    %c0_i32_0 = arith.constant 0 : i32
    %c0_i32_1 = arith.constant 0 : i32
    return %c0_i32, %c0_i32_0 : i32, i32
  }
  func.func @transform_3(%arg0: i32) -> (i32, i32) {
    %c1_i32 = arith.constant 1 : i32
    %c0_i32 = arith.constant 0 : i32
    return %arg0, %c1_i32 : i32, i32
  }
  func.func @transform_4(%arg0: i32) -> (i32, i32) {
    %c0_i32 = arith.constant 0 : i32
    %c0_i32_0 = arith.constant 0 : i32
    %c0_i32_1 = arith.constant 0 : i32
    return %c0_i32, %c0_i32_0 : i32, i32
  }
  func.func @transform_5(%arg0: i32) -> (i32, i32) {
    %c0_i32 = arith.constant 0 : i32
    %c0_i32_0 = arith.constant 0 : i32
    %c0_i32_1 = arith.constant 0 : i32
    return %c0_i32, %c0_i32_0 : i32, i32
  }
  func.func @transform_6(%arg0: i32) -> (i32, i32) {
    %c0_i32 = arith.constant 0 : i32
    %c0_i32_0 = arith.constant 0 : i32
    return %arg0, %c0_i32 : i32, i32
  }
}

</mosaic_0001>

<bundles_post_ra>
// kernel: resnet_block_pallas.5
= control target key start
LH: loop header
LB: loop body
LE: loop exit
PB: predicated region body
PF: predicated region fallthrough
CT: control target
= control target key end

     0   :  { %s553_s0 = inlined_call_operand.vmem [shape: bf16[128,256], index: 0, kind: input, shape index: {}]   ;;  %s554_s1 = inlined_call_operand.vmem [shape: f32[1,128], index: 1, kind: input, shape index: {}]   ;;  %s555_s2 = inlined_call_operand.vmem [shape: f32[1,128], index: 2, kind: input, shape index: {}]   ;;  %s556_s3 = inlined_call_operand.vmem [shape: bf16[128,128], index: 3, kind: output, shape index: {}]  }
   0x1   :  { %v26_v0 = vld [vmem:[%s553_s0] sm:$0xf]  ;;  %v28_v1 = vld [vmem:[%s553_s0 + $0x8] sm:$0xf]  ;;  %v30_v2 = vld [vmem:[%s553_s0 + $0x10] sm:$0xf] }
   0x2   :  { %27 = vst [vmem:[#allocation2] sm:$0xf] %v26_v0  ;;  %29 = vst [vmem:[#allocation2 + $0x4] sm:$0xf] %v28_v1  ;;  %v32_v3 = vld [vmem:[%s553_s0 + $0x18] sm:$0xf] }
   0x3   :  { %31 = vst [vmem:[#allocation2 + $0x8] sm:$0xf] %v30_v2  ;;  %v34_v4 = vld [vmem:[%s553_s0 + $0x20] sm:$0xf]  ;;  %v36_v5 = vld [vmem:[%s553_s0 + $0x28] sm:$0xf] }
   0x4   :  { %33 = vst [vmem:[#allocation2 + $0xc] sm:$0xf] %v32_v3  ;;  %35 = vst [vmem:[#allocation2 + $0x10] sm:$0xf] %v34_v4  ;;  %v38_v6 = vld [vmem:[%s553_s0 + $0x30] sm:$0xf] }
   0x5   :  { %37 = vst [vmem:[#allocation2 + $0x14] sm:$0xf] %v36_v5  ;;  %v40_v7 = vld [vmem:[%s553_s0 + $0x38] sm:$0xf]  ;;  %v42_v8 = vld [vmem:[%s553_s0 + $0x40] sm:$0xf] }
   0x6   :  { %39 = vst [vmem:[#allocation2 + $0x18] sm:$0xf] %v38_v6  ;;  %41 = vst [vmem:[#allocation2 + $0x1c] sm:$0xf] %v40_v7  ;;  %v44_v9 = vld [vmem:[%s553_s0 + $0x48] sm:$0xf] }
   0x7   :  { %43 = vst [vmem:[#allocation2 + $0x20] sm:$0xf] %v42_v8  ;;  %v46_v10 = vld [vmem:[%s553_s0 + $0x50] sm:$0xf]  ;;  %v48_v11 = vld [vmem:[%s553_s0 + $0x58] sm:$0xf] }
   0x8   :  { %45 = vst [vmem:[#allocation2 + $0x24] sm:$0xf] %v44_v9  ;;  %47 = vst [vmem:[#allocation2 + $0x28] sm:$0xf] %v46_v10  ;;  %v50_v12 = vld [vmem:[%s553_s0 + $0x60] sm:$0xf] }
   0x9   :  { %49 = vst [vmem:[#allocation2 + $0x2c] sm:$0xf] %v48_v11  ;;  %v52_v13 = vld [vmem:[%s553_s0 + $0x68] sm:$0xf]  ;;  %v54_v14 = vld [vmem:[%s553_s0 + $0x70] sm:$0xf] }
   0xa   :  { %51 = vst [vmem:[#allocation2 + $0x30] sm:$0xf] %v50_v12  ;;  %53 = vst [vmem:[#allocation2 + $0x34] sm:$0xf] %v52_v13  ;;  %v56_v15 = vld [vmem:[%s553_s0 + $0x78] sm:$0xf] }
   0xb   :  { %55 = vst [vmem:[#allocation2 + $0x38] sm:$0xf] %v54_v14  ;;  %57 = vst [vmem:[#allocation2 + $0x3c] sm:$0xf] %v56_v15  ;;  %v334_v16 = vld [vmem:[#allocation2] sm:$0xff]   ;;  %v405_v20 = vld [vmem:[#allocation2 + $0x8] sm:$0xff]  }
   0xc   :  { %v490_v17 = vld [vmem:[%s554_s1] ss:$0 sm:$0xff]  ;;  %v335_v18 = vunpack.c.l.bf16 %v334_v16  ;;  %v336_v19 = vunpack.c.h.bf16 %v334_v16  ;;  %v406_v21 = vld [vmem:[#allocation2 + $0x10] sm:$0xff]   ;;  %v339_v23 = vunpack.c.l.bf16 %v405_v20  ;;  %v340_v24 = vunpack.c.h.bf16 %v405_v20 }
   0xd   :  { %v495_v22 = vld [vmem:[%s555_s2] ss:$0 sm:$0xff]  ;;  %v343_v25 = vunpack.c.l.bf16 %v406_v21  ;;  %v344_v26 = vunpack.c.h.bf16 %v406_v21  ;;  %v407_v27 = vld [vmem:[#allocation2 + $0x18] sm:$0xff]  }
   0xe   :  { %v156_v28 = vmul.f32 %v335_v18, %v490_v17  ;;  %v157_v29 = vmul.f32 %v336_v19, %v490_v17  ;;  %v347_v30 = vunpack.c.l.bf16 %v407_v27  ;;  %v348_v31 = vunpack.c.h.bf16 %v407_v27 }
   0xf   :  { %v158_v32 = vmul.f32 %v339_v23, %v490_v17  ;;  %v159_v33 = vmul.f32 %v340_v24, %v490_v17  ;;  %v160_v34 = vmul.f32 %v343_v25, %v490_v17  ;;  %v161_v35 = vmul.f32 %v344_v26, %v490_v17  ;;  %v408_v44 = vld [vmem:[#allocation2 + $0x20] sm:$0xff]  }
  0x10   :  { %v179_v36 = vadd.f32 %v495_v22, %v156_v28  ;;  %v180_v37 = vadd.f32 %v495_v22, %v157_v29  ;;  %v162_v38 = vmul.f32 %v347_v30, %v490_v17  ;;  %v163_v39 = vmul.f32 %v348_v31, %v490_v17  ;;  %v409_v49 = vld [vmem:[#allocation2 + $0x28] sm:$0xff]  }
  0x11   :  { %v181_v40 = vadd.f32 %v495_v22, %v158_v32  ;;  %v182_v41 = vadd.f32 %v495_v22, %v159_v33  ;;  %v183_v42 = vadd.f32 %v495_v22, %v160_v34  ;;  %v184_v43 = vadd.f32 %v495_v22, %v161_v35  ;;  %v410_v54 = vld [vmem:[#allocation2 + $0x30] sm:$0xff]  }
  0x12   :  { %v195_v45 = vmax.f32 %v179_v36, 0.0  ;;  %v196_v46 = vmax.f32 %v180_v37, 0.0  ;;  %v185_v47 = vadd.f32 %v495_v22, %v162_v38  ;;  %v186_v48 = vadd.f32 %v495_v22, %v163_v39  ;;  %v411_v59 = vld [vmem:[#allocation2 + $0x38] sm:$0xff]  }
  0x13   :  { %v197_v50 = vmax.f32 %v181_v40, 0.0  ;;  %v198_v51 = vmax.f32 %v182_v41, 0.0  ;;  %v199_v52 = vmax.f32 %v183_v42, 0.0  ;;  %v200_v53 = vmax.f32 %v184_v43, 0.0 }
  0x14   :  { %v368_v55 = vpack.c.bf16 %v196_v46, %v195_v45  ;;  %v201_v56 = vmax.f32 %v185_v47, 0.0  ;;  %v202_v57 = vmax.f32 %v186_v48, 0.0  ;;  %v351_v58 = vunpack.c.l.bf16 %v408_v44 }
  0x15   :  { %v373_v60 = vpack.c.bf16 %v198_v51, %v197_v50  ;;  %v378_v61 = vpack.c.bf16 %v200_v53, %v199_v52  ;;  %v352_v62 = vunpack.c.h.bf16 %v408_v44  ;;  %v355_v63 = vunpack.c.l.bf16 %v409_v49 }
  0x16   :  { %369 = vst [vmem:[%s556_s3] sm:$0xff] %v368_v55   ;;  %v383_v0 = vpack.c.bf16 %v202_v57, %v201_v56  ;;  %v164_v1 = vmul.f32 %v351_v58, %v490_v17  ;;  %v356_v2 = vunpack.c.h.bf16 %v409_v49  ;;  %v359_v3 = vunpack.c.l.bf16 %v410_v54 }
  0x17   :  { %412 = vst [vmem:[%s556_s3 + $0x8] sm:$0xff] %v373_v60   ;;  %413 = vst [vmem:[%s556_s3 + $0x10] sm:$0xff] %v378_v61   ;;  %v165_v4 = vmul.f32 %v352_v62, %v490_v17  ;;  %v166_v5 = vmul.f32 %v355_v63, %v490_v17  ;;  %v360_v6 = vunpack.c.h.bf16 %v410_v54  ;;  %v363_v7 = vunpack.c.l.bf16 %v411_v59 }
  0x18   :  { %414 = vst [vmem:[%s556_s3 + $0x18] sm:$0xff] %v383_v0   ;;  %v187_v8 = vadd.f32 %v495_v22, %v164_v1  ;;  %v167_v9 = vmul.f32 %v356_v2, %v490_v17  ;;  %v168_v10 = vmul.f32 %v359_v3, %v490_v17  ;;  %v364_v11 = vunpack.c.h.bf16 %v411_v59 }
  0x19   :  { %v188_v12 = vadd.f32 %v495_v22, %v165_v4  ;;  %v189_v13 = vadd.f32 %v495_v22, %v166_v5  ;;  %v169_v14 = vmul.f32 %v360_v6, %v490_v17  ;;  %v170_v15 = vmul.f32 %v363_v7, %v490_v17 }
  0x1a   :  { %v203_v16 = vmax.f32 %v187_v8, 0.0  ;;  %v190_v18 = vadd.f32 %v495_v22, %v167_v9  ;;  %v191_v19 = vadd.f32 %v495_v22, %v168_v10  ;;  %v171_v20 = vmul.f32 %v364_v11, %v490_v17 }
  0x1b   :  { %v204_v21 = vmax.f32 %v188_v12, 0.0  ;;  %v205_v23 = vmax.f32 %v189_v13, 0.0  ;;  %v192_v24 = vadd.f32 %v495_v22, %v169_v14  ;;  %v193_v25 = vadd.f32 %v495_v22, %v170_v15 }
  0x1c   :  { %v206_v26 = vmax.f32 %v190_v18, 0.0  ;;  %v207_v27 = vmax.f32 %v191_v19, 0.0  ;;  %v194_v28 = vadd.f32 %v495_v22, %v171_v20 }
  0x1d   :  { %v388_v29 = vpack.c.bf16 %v204_v21, %v203_v16  ;;  %v208_v30 = vmax.f32 %v192_v24, 0.0  ;;  %v209_v31 = vmax.f32 %v193_v25, 0.0 }
  0x1e   :  { %v393_v32 = vpack.c.bf16 %v206_v26, %v205_v23  ;;  %v210_v33 = vmax.f32 %v194_v28, 0.0 }
  0x1f   :  { %415 = vst [vmem:[%s556_s3 + $0x20] sm:$0xff] %v388_v29   ;;  %v398_v17 = vpack.c.bf16 %v208_v30, %v207_v27 }
  0x20   :  { %416 = vst [vmem:[%s556_s3 + $0x28] sm:$0xff] %v393_v32   ;;  %v403_v34 = vpack.c.bf16 %v210_v33, %v209_v31 }
  0x21   :  { %417 = vst [vmem:[%s556_s3 + $0x30] sm:$0xff] %v398_v17  }
  0x22   :  { %418 = vst [vmem:[%s556_s3 + $0x38] sm:$0xff] %v403_v34  }

// kernel: resnet_block_pallas.4
= control target key start
LH: loop header
LB: loop body
LE: loop exit
PB: predicated region body
PF: predicated region fallthrough
CT: control target
= control target key end

     0   :  { %v637_v1 = vmov 0   ;;  %s887_s1 = inlined_call_operand.vmem [shape: bf16[128,256], index: 1, kind: input, shape index: {}]   ;;  %s888_s0 = inlined_call_operand.vmem [shape: bf16[128,128], index: 0, kind: input, shape index: {}]   ;;  %s889_s2 = inlined_call_operand.vmem [shape: bf16[128,256], index: 2, kind: output, shape index: {0}]   ;;  %s890_s3 = inlined_call_operand.vmem [shape: f32[8,256], index: 3, kind: output, shape index: {1}]   ;;  %s891_s4 = inlined_call_operand.vmem [shape: f32[8,256], index: 4, kind: output, shape index: {2}]  }
   0x1   :  { %v605_v0 = vld [vmem:[%s887_s1 + $0x74] ss:$8 sps:$4 sm:$0xff]   ;;  %207 = vmatprep.mubr.bf16.mxu0 %v637_v1  ;;  %247 = vmatprep.mubr.bf16.mxu1 %v637_v1  ;;  %v607_v2 = vld [vmem:[%s887_s1 + $0x70] ss:$8 sps:$4 sm:$0xff]   ;;  %v608_v3 = vld [vmem:[%s887_s1 + $0x64] ss:$8 sps:$4 sm:$0xff]  }
   0x2   :  { %175 = vmatprep.subr.bf16.mxu0 %v605_v0  ;;  %588 = vmatprep.subr.bf16.mxu1 %v605_v0  ;;  %v610_v4 = vld [vmem:[%s887_s1 + $0x60] ss:$8 sps:$4 sm:$0xff]   ;;  %v611_v5 = vld [vmem:[%s887_s1 + $0x54] ss:$8 sps:$4 sm:$0xff]   ;;  %v613_v6 = vld [vmem:[%s887_s1 + $0x50] ss:$8 sps:$4 sm:$0xff]  }
   0x3   :  { %176 = vmatpush1.bf16.msra.mxu0 %v607_v2  ;;  %596 = vmatpush1.bf16.msra.mxu1 %v607_v2  ;;  %v614_v7 = vld [vmem:[%s887_s1 + $0x44] ss:$8 sps:$4 sm:$0xff]   ;;  %v616_v8 = vld [vmem:[%s887_s1 + $0x40] ss:$8 sps:$4 sm:$0xff]   ;;  %v617_v9 = vld [vmem:[%s887_s1 + $0x34] ss:$8 sps:$4 sm:$0xff]  }
   0x4   :  { %177 = vmatprep.subr.bf16.mxu0 %v608_v3  ;;  %589 = vmatprep.subr.bf16.mxu1 %v608_v3  ;;  %v619_v10 = vld [vmem:[%s887_s1 + $0x30] ss:$8 sps:$4 sm:$0xff]   ;;  %v620_v11 = vld [vmem:[%s887_s1 + $0x24] ss:$8 sps:$4 sm:$0xff]   ;;  %v622_v12 = vld [vmem:[%s887_s1 + $0x20] ss:$8 sps:$4 sm:$0xff]  }
   0x5   :  { %v623_v13 = vld [vmem:[%s887_s1 + $0x14] ss:$8 sps:$4 sm:$0xff]   ;;  %v625_v14 = vld [vmem:[%s887_s1 + $0x10] ss:$8 sps:$4 sm:$0xff]   ;;  %v626_v15 = vld [vmem:[%s887_s1 + $0x4] ss:$8 sps:$4 sm:$0xff]  }
   0x6   :  { %v628_v16 = vld [vmem:[%s887_s1] ss:$8 sps:$4 sm:$0xff]   ;;  %v632_v21 = vld [vmem:[%s888_s0 + $0x10] sm:$0xff]   ;;  %v634_v23 = vld [vmem:[%s888_s0 + $0x18] sm:$0xff]  }
   0x7   :  { %178 = vmatpush1.bf16.msra.mxu0 %v610_v4  ;;  %597 = vmatpush1.bf16.msra.mxu1 %v610_v4  ;;  %v629_v17 = vld [vmem:[%s888_s0] sm:$0xff]   ;;  %v630_v19 = vld [vmem:[%s888_s0 + $0x8] sm:$0xff]   ;;  %v635_v22 = vld [vmem:[%s888_s0 + $0x30] sm:$0xff]  }
   0x8   :  { %179 = vmatprep.subr.bf16.mxu0 %v611_v5  ;;  %590 = vmatprep.subr.bf16.mxu1 %v611_v5  ;;  %v631_v18 = vld [vmem:[%s888_s0 + $0x20] sm:$0xff]   ;;  %v633_v20 = vld [vmem:[%s888_s0 + $0x28] sm:$0xff]   ;;  %v636_v24 = vld [vmem:[%s888_s0 + $0x38] sm:$0xff]  }
   0xb   :  { %180 = vmatpush1.bf16.msra.mxu0 %v613_v6  ;;  %598 = vmatpush1.bf16.msra.mxu1 %v613_v6 }
   0xc   :  { %181 = vmatprep.subr.bf16.mxu0 %v614_v7  ;;  %591 = vmatprep.subr.bf16.mxu1 %v614_v7 }
   0xf   :  { %182 = vmatpush1.bf16.msra.mxu0 %v616_v8  ;;  %599 = vmatpush1.bf16.msra.mxu1 %v616_v8 }
  0x10   :  { %183 = vmatprep.subr.bf16.mxu0 %v617_v9  ;;  %592 = vmatprep.subr.bf16.mxu1 %v617_v9 }
  0x13   :  { %184 = vmatpush1.bf16.msra.mxu0 %v619_v10  ;;  %600 = vmatpush1.bf16.msra.mxu1 %v619_v10 }
  0x14   :  { %185 = vmatprep.subr.bf16.mxu0 %v620_v11  ;;  %593 = vmatprep.subr.bf16.mxu1 %v620_v11 }
  0x17   :  { %186 = vmatpush1.bf16.msra.mxu0 %v622_v12  ;;  %601 = vmatpush1.bf16.msra.mxu1 %v622_v12 }
  0x18   :  { %187 = vmatprep.subr.bf16.mxu0 %v623_v13  ;;  %594 = vmatprep.subr.bf16.mxu1 %v623_v13 }
  0x1b   :  { %188 = vmatpush1.bf16.msra.mxu0 %v625_v14  ;;  %602 = vmatpush1.bf16.msra.mxu1 %v625_v14 }
  0x1c   :  { %189 = vmatprep.subr.bf16.mxu0 %v626_v15  ;;  %595 = vmatprep.subr.bf16.mxu1 %v626_v15 }
  0x1f   :  { %190 = vmatpush1.bf16.msra.mxu0 %v628_v16  ;;  %603 = vmatpush1.bf16.msra.mxu1 %v628_v16 }
  0x22   :  { %208 = vmatmul.mubr.bf16.vlgmr.msra.gmra.mxu0 %v629_v17  ;;  %248 = vmatmul.mubr.bf16.vlgmr.msra.gmra.mxu1 %v631_v18 }
  0x23   :  { %217 = vmatprep.mubr.bf16.mxu0 %v637_v1  ;;  %257 = vmatprep.mubr.bf16.mxu1 %v637_v1 }
  0x2a   :  { %218 = vmatmul.mubr.bf16.gmra.mxu0 %v630_v19  ;;  %258 = vmatmul.mubr.bf16.gmra.mxu1 %v633_v20 }
  0x2b   :  { %227 = vmatprep.mubr.bf16.mxu0 %v637_v1  ;;  %267 = vmatprep.mubr.bf16.mxu1 %v637_v1 }
  0x32   :  { %228 = vmatmul.mubr.bf16.gmra.mxu0 %v632_v21  ;;  %268 = vmatmul.mubr.bf16.gmra.mxu1 %v635_v22 }
  0x33   :  { %237 = vmatprep.mubr.bf16.mxu0 %v637_v1  ;;  %277 = vmatprep.mubr.bf16.mxu1 %v637_v1 }
  0x3a   :  { %238 = vmatmul.mubr.bf16.gmra.mxu0 %v634_v23  ;;  %278 = vmatmul.mubr.bf16.gmra.mxu1 %v636_v24 }
  0xe2   :  { %v209_v25 = vpop.f32.mrf.mxu0  ;;  %v743_v26 = vpop.f32.mrf.mxu1 }
  0xe3   :  { %v442_v49 = vmul.f32 %v209_v25, %v209_v25 }
  0xe4   :  { %v211_v27 = vpop.f32.mrf.mxu0  ;;  %v745_v28 = vpop.f32.mrf.mxu1 }
  0xe5   :  { %v572_v29 = vpack.c.bf16 %v211_v27, %v209_v25  ;;  %v580_v30 = vpack.c.bf16 %v745_v28, %v743_v26  ;;  %v443_v63 = vmul.f32 %v211_v27, %v211_v27 }
  0xe6   :  { %v213_v31 = vpop.f32.mrf.mxu0  ;;  %v749_v32 = vpop.f32.mrf.mxu1 }
  0xe7   :  { %384 = vst [vmem:[%s889_s2] sm:$0xff] %v572_v29  ;;  %392 = vst [vmem:[%s889_s2 + $0x40] sm:$0xff] %v580_v30  ;;  %v444_v45 = vmul.f32 %v213_v31, %v213_v31  ;;  %v400_v54 = vadd.f32 %v213_v31, %v209_v25 }
  0xe8   :  { %v215_v33 = vpop.f32.mrf.mxu0  ;;  %v757_v34 = vpop.f32.mrf.mxu1 }
  0xe9   :  { %v573_v35 = vpack.c.bf16 %v215_v33, %v213_v31  ;;  %v581_v37 = vpack.c.bf16 %v757_v34, %v749_v32  ;;  %v474_v55 = vadd.f32 %v444_v45, %v442_v49  ;;  %v445_v56 = vmul.f32 %v215_v33, %v215_v33 }
  0xea   :  { %v219_v36 = vpop.f32.mrf.mxu0  ;;  %v761_v38 = vpop.f32.mrf.mxu1  ;;  %v421_v60 = vadd.f32 %v215_v33, %v211_v27 }
  0xeb   :  { %385 = vst [vmem:[%s889_s2 + $0x8] sm:$0xff] %v573_v35  ;;  %393 = vst [vmem:[%s889_s2 + $0x48] sm:$0xff] %v581_v37  ;;  %v446_v50 = vmul.f32 %v219_v36, %v219_v36  ;;  %v401_v61 = vadd.f32 %v400_v54, %v219_v36  ;;  %v495_v8 = vadd.f32 %v445_v56, %v443_v63 }
  0xec   :  { %v221_v39 = vpop.f32.mrf.mxu0  ;;  %v769_v40 = vpop.f32.mrf.mxu1 }
  0xed   :  { %v574_v41 = vpack.c.bf16 %v221_v39, %v219_v36  ;;  %v582_v43 = vpack.c.bf16 %v769_v40, %v761_v38  ;;  %v475_v0 = vadd.f32 %v474_v55, %v446_v50  ;;  %v447_v1 = vmul.f32 %v221_v39, %v221_v39 }
  0xee   :  { %v223_v42 = vpop.f32.mrf.mxu0  ;;  %v773_v44 = vpop.f32.mrf.mxu1  ;;  %v422_v5 = vadd.f32 %v421_v60, %v221_v39 }
  0xef   :  { %386 = vst [vmem:[%s889_s2 + $0x10] sm:$0xff] %v574_v41  ;;  %394 = vst [vmem:[%s889_s2 + $0x50] sm:$0xff] %v582_v43  ;;  %v448_v57 = vmul.f32 %v223_v42, %v223_v42  ;;  %v402_v6 = vadd.f32 %v401_v61, %v223_v42  ;;  %v496_v17 = vadd.f32 %v495_v8, %v447_v1 }
  0xf0   :  { %v225_v46 = vpop.f32.mrf.mxu0  ;;  %v781_v47 = vpop.f32.mrf.mxu1 }
  0xf1   :  { %v575_v48 = vpack.c.bf16 %v225_v46, %v223_v42  ;;  %v583_v52 = vpack.c.bf16 %v781_v47, %v773_v44  ;;  %v476_v9 = vadd.f32 %v475_v0, %v448_v57  ;;  %v449_v10 = vmul.f32 %v225_v46, %v225_v46 }
  0xf2   :  { %v229_v51 = vpop.f32.mrf.mxu0  ;;  %v785_v53 = vpop.f32.mrf.mxu1  ;;  %v423_v13 = vadd.f32 %v422_v5, %v225_v46  ;;  %v460_v0 = vmul.f32 %v749_v32, %v749_v32 }
  0xf3   :  { %387 = vst [vmem:[%s889_s2 + $0x18] sm:$0xff] %v575_v48  ;;  %395 = vst [vmem:[%s889_s2 + $0x58] sm:$0xff] %v583_v52  ;;  %v450_v7 = vmul.f32 %v229_v51, %v229_v51  ;;  %v403_v14 = vadd.f32 %v402_v6, %v229_v51  ;;  %v497_v27 = vadd.f32 %v496_v17, %v449_v10 }
  0xf4   :  { %v231_v58 = vpop.f32.mrf.mxu0  ;;  %v793_v59 = vpop.f32.mrf.mxu1  ;;  %v462_v6 = vmul.f32 %v761_v38, %v761_v38  ;;  %v466_v17 = vmul.f32 %v785_v53, %v785_v53 }
  0xf5   :  { %v576_v62 = vpack.c.bf16 %v231_v58, %v229_v51  ;;  %v584_v3 = vpack.c.bf16 %v793_v59, %v785_v53  ;;  %v451_v18 = vmul.f32 %v231_v58, %v231_v58  ;;  %v477_v22 = vadd.f32 %v476_v9, %v450_v7 }
  0xf6   :  { %v233_v2 = vpop.f32.mrf.mxu0  ;;  %v797_v4 = vpop.f32.mrf.mxu1  ;;  %v424_v23 = vadd.f32 %v423_v13, %v231_v58  ;;  %v458_v51 = vmul.f32 %v743_v26, %v743_v26  ;;  %v461_v9 = vmul.f32 %v757_v34, %v757_v34 }
  0xf7   :  { %388 = vst [vmem:[%s889_s2 + $0x20] sm:$0xff] %v576_v62  ;;  %396 = vst [vmem:[%s889_s2 + $0x60] sm:$0xff] %v584_v3  ;;  %v452_v15 = vmul.f32 %v233_v2, %v233_v2  ;;  %v404_v24 = vadd.f32 %v403_v14, %v233_v2  ;;  %v498_v39 = vadd.f32 %v497_v27, %v451_v18 }
  0xf8   :  { %v235_v11 = vpop.f32.mrf.mxu0  ;;  %v805_v12 = vpop.f32.mrf.mxu1 }
  0xf9   :  { %v577_v16 = vpack.c.bf16 %v235_v11, %v233_v2  ;;  %v585_v20 = vpack.c.bf16 %v805_v12, %v797_v4  ;;  %v453_v29 = vmul.f32 %v235_v11, %v235_v11  ;;  %v478_v33 = vadd.f32 %v477_v22, %v452_v15 }
  0xfa   :  { %v239_v19 = vpop.f32.mrf.mxu0  ;;  %v809_v21 = vpop.f32.mrf.mxu1  ;;  %v425_v35 = vadd.f32 %v424_v23, %v235_v11  ;;  %v463_v15 = vmul.f32 %v769_v40, %v769_v40 }
  0xfb   :  { %389 = vst [vmem:[%s889_s2 + $0x28] sm:$0xff] %v577_v16  ;;  %v454_v25 = vmul.f32 %v239_v19, %v239_v19  ;;  %397 = vst [vmem:[%s889_s2 + $0x68] sm:$0xff] %v585_v20  ;;  %v405_v36 = vadd.f32 %v404_v24, %v239_v19  ;;  %v499_v52 = vadd.f32 %v498_v39, %v453_v29 }
  0xfc   :  { %v241_v30 = vpop.f32.mrf.mxu0  ;;  %v817_v31 = vpop.f32.mrf.mxu1  ;;  %v467_v24 = vmul.f32 %v793_v59, %v793_v59 }
  0xfd   :  { %v578_v37 = vpack.c.bf16 %v241_v30, %v239_v19  ;;  %v455_v41 = vmul.f32 %v241_v30, %v241_v30  ;;  %v586_v43 = vpack.c.bf16 %v817_v31, %v809_v21  ;;  %v479_v46 = vadd.f32 %v478_v33, %v454_v25 }
  0xfe   :  { %v243_v42 = vpop.f32.mrf.mxu0  ;;  %v283_v45 = vpop.f32.mrf.mxu1  ;;  %v426_v48 = vadd.f32 %v425_v35, %v241_v30  ;;  %v465_v19 = vmul.f32 %v781_v47, %v781_v47  ;;  %v469_v30 = vmul.f32 %v805_v12, %v805_v12 }
  0xff   :  { %390 = vst [vmem:[%s889_s2 + $0x30] sm:$0xff] %v578_v37  ;;  %v406_v49 = vadd.f32 %v405_v36, %v243_v42  ;;  %v456_v50 = vmul.f32 %v243_v42, %v243_v42  ;;  %398 = vst [vmem:[%s889_s2 + $0x70] sm:$0xff] %v586_v43  ;;  %v500_v61 = vadd.f32 %v499_v52, %v455_v41 }
 0x100   :  { %v245_v54 = vpop.f32.mrf.mxu0  ;;  %v285_v55 = vpop.f32.mrf.mxu1  ;;  %v472_v37 = vmul.f32 %v283_v45, %v283_v45 }
 0x101   :  { %v407_v56 = vadd.f32 %v406_v49, %v743_v26  ;;  %v480_v57 = vadd.f32 %v479_v46, %v456_v50  ;;  %v579_v58 = vpack.c.bf16 %v245_v54, %v243_v42  ;;  %v427_v60 = vadd.f32 %v426_v48, %v245_v54 }
 0x102   :  { %v457_v62 = vmul.f32 %v245_v54, %v245_v54  ;;  %v587_v63 = vpack.c.bf16 %v285_v55, %v283_v45  ;;  %v459_v26 = vmul.f32 %v745_v28, %v745_v28  ;;  %v473_v48 = vmul.f32 %v285_v55, %v285_v55 }
 0x103   :  { %v408_v1 = vadd.f32 %v407_v56, %v749_v32  ;;  %v481_v2 = vadd.f32 %v480_v57, %v458_v51  ;;  %391 = vst [vmem:[%s889_s2 + $0x38] sm:$0xff] %v579_v58  ;;  %v428_v3 = vadd.f32 %v427_v60, %v745_v28  ;;  %v464_v28 = vmul.f32 %v773_v44, %v773_v44 }
 0x104   :  { %v501_v5 = vadd.f32 %v500_v61, %v457_v62  ;;  %399 = vst [vmem:[%s889_s2 + $0x78] sm:$0xff] %v587_v63 }
 0x105   :  { %v482_v7 = vadd.f32 %v481_v2, %v460_v0  ;;  %v429_v32 = vadd.f32 %v428_v3, %v757_v34  ;;  %v409_v8 = vadd.f32 %v408_v1, %v761_v38 }
 0x106   :  { %v502_v10 = vadd.f32 %v501_v5, %v459_v26 }
 0x107   :  { %v430_v11 = vadd.f32 %v429_v32, %v769_v40  ;;  %v410_v13 = vadd.f32 %v409_v8, %v773_v44  ;;  %v483_v14 = vadd.f32 %v482_v7, %v462_v6  ;;  %v468_v44 = vmul.f32 %v797_v4, %v797_v4 }
 0x108   :  { %v503_v16 = vadd.f32 %v502_v10, %v461_v9 }
 0x109   :  { %v411_v38 = vadd.f32 %v410_v13, %v785_v53  ;;  %v484_v18 = vadd.f32 %v483_v14, %v464_v28  ;;  %v431_v34 = vadd.f32 %v430_v11, %v781_v47  ;;  %v470_v47 = vmul.f32 %v809_v21, %v809_v21 }
 0x10a   :  { %v504_v20 = vadd.f32 %v503_v16, %v463_v15 }
 0x10b   :  { %v412_v22 = vadd.f32 %v411_v38, %v797_v4  ;;  %v485_v23 = vadd.f32 %v484_v18, %v466_v17  ;;  %v432_v40 = vadd.f32 %v431_v34, %v793_v59  ;;  %v471_v59 = vmul.f32 %v817_v31, %v817_v31 }
 0x10c   :  { %v505_v25 = vadd.f32 %v504_v20, %v465_v19 }
 0x10d   :  { %v486_v53 = vadd.f32 %v485_v23, %v468_v44  ;;  %v433_v27 = vadd.f32 %v432_v40, %v805_v12  ;;  %v413_v29 = vadd.f32 %v412_v22, %v809_v21 }
 0x10e   :  { %v506_v33 = vadd.f32 %v505_v25, %v467_v24 }
 0x10f   :  { %v487_v4 = vadd.f32 %v486_v53, %v470_v47  ;;  %v434_v35 = vadd.f32 %v433_v27, %v817_v31  ;;  %v414_v36 = vadd.f32 %v413_v29, %v283_v45 }
 0x110   :  { %v507_v39 = vadd.f32 %v506_v33, %v469_v30 }
 0x111   :  { %v415_v41 = vrot.slane %v414_v36, 4  ;;  %v488_v42 = vadd.f32 %v487_v4, %v472_v37  ;;  %v435_v43 = vadd.f32 %v434_v35, %v285_v55 }
 0x112   :  { %v508_v46 = vadd.f32 %v507_v39, %v471_v59 }
 0x113   :  { %v416_v49 = vadd.f32 %v415_v41, %v414_v36  ;;  %v489_v21 = vrot.slane %v488_v42, 4  ;;  %v436_v50 = vrot.slane %v435_v43, 4 }
 0x114   :  { %v509_v51 = vadd.f32 %v508_v46, %v473_v48 }
 0x115   :  { %v417_v12 = vrot.slane %v416_v49, 2  ;;  %v490_v52 = vadd.f32 %v489_v21, %v488_v42  ;;  %v437_v54 = vadd.f32 %v436_v50, %v435_v43 }
 0x116   :  { %v510_v56 = vrot.slane %v509_v51, 4 }
 0x117   :  { %v418_v57 = vadd.f32 %v417_v12, %v416_v49  ;;  %v491_v58 = vrot.slane %v490_v52, 2  ;;  %v438_v45 = vrot.slane %v437_v54, 2 }
 0x118   :  { %v511_v60 = vadd.f32 %v510_v56, %v509_v51 }
 0x119   :  { %v419_v61 = vrot.slane %v418_v57, 1  ;;  %v492_v62 = vadd.f32 %v491_v58, %v490_v52  ;;  %v439_v31 = vadd.f32 %v438_v45, %v437_v54 }
 0x11a   :  { %v512_v63 = vrot.slane %v511_v60, 2 }
 0x11b   :  { %v420_v0 = vadd.f32 %v419_v61, %v418_v57  ;;  %v493_v1 = vrot.slane %v492_v62, 1  ;;  %v440_v2 = vrot.slane %v439_v31, 1 }
 0x11c   :  { %v513_v55 = vadd.f32 %v512_v63, %v511_v60 }
 0x11d   :  { %v494_v3 = vadd.f32 %v493_v1, %v492_v62  ;;  %v441_v26 = vadd.f32 %v440_v2, %v439_v31  ;;  %516 = vst [vmem:[%s890_s3] sm:$0xff] %v420_v0 }
 0x11e   :  { %v514_v5 = vrot.slane %v513_v55, 1 }
 0x11f   :  { %517 = vst [vmem:[%s890_s3 + $0x8] sm:$0xff] %v441_v26  ;;  %518 = vst [vmem:[%s891_s4] sm:$0xff] %v494_v3 }
 0x120   :  { %v515_v6 = vadd.f32 %v514_v5, %v513_v55 }
 0x122   :  { %519 = vst [vmem:[%s891_s4 + $0x8] sm:$0xff] %v515_v6 }

// kernel: resnet_block_pallas.6
= control target key start
LH: loop header
LB: loop body
LE: loop exit
PB: predicated region body
PF: predicated region fallthrough
CT: control target
= control target key end

     0   :  { %s670_s1 = inlined_call_operand.vmem [shape: bf16[128,128], index: 1, kind: input, shape index: {}]   ;;  %s671_s0 = inlined_call_operand.vmem [shape: bf16[128,128], index: 0, kind: input, shape index: {}]   ;;  %s672_s2 = inlined_call_operand.vmem [shape: bf16[128,128], index: 2, kind: output, shape index: {0}]   ;;  %s673_s3 = inlined_call_operand.vmem [shape: f32[8,128], index: 3, kind: output, shape index: {1}]   ;;  %s674_s4 = inlined_call_operand.vmem [shape: f32[8,128], index: 4, kind: output, shape index: {2}]  }
   0x1   :  { %v551_v0 = vld [vmem:[%s670_s1 + $0x38] sm:$0xff]   ;;  %v552_v1 = vld [vmem:[%s670_s1 + $0x30] sm:$0xff]   ;;  %v553_v2 = vld [vmem:[%s670_s1 + $0x28] sm:$0xff]  }
   0x2   :  { %503 = vmatprep.subr.bf16.mxu0 %v551_v0  ;;  %535 = vmatprep.subr.bf16.mxu1 %v551_v0  ;;  %v554_v3 = vld [vmem:[%s670_s1 + $0x20] sm:$0xff]   ;;  %v555_v5 = vld [vmem:[%s670_s1 + $0x18] sm:$0xff]   ;;  %v556_v7 = vld [vmem:[%s670_s1 + $0x10] sm:$0xff]  }
   0x3   :  { %504 = vmatpush3.bf16.msra.mxu0 %v551_v0  ;;  %543 = vmatpush3.bf16.msra.mxu1 %v551_v0  ;;  %v559_v4 = vld [vmem:[%s671_s0] sm:$0xff]   ;;  %v557_v8 = vld [vmem:[%s670_s1 + $0x8] sm:$0xff]   ;;  %v561_v12 = vld [vmem:[%s671_s0 + $0x10] sm:$0xff]  }
   0x4   :  { %505 = vmatprep.subr.bf16.mxu0 %v552_v1  ;;  %536 = vmatprep.subr.bf16.mxu1 %v552_v1  ;;  %v563_v6 = vld [vmem:[%s671_s0 + $0x20] sm:$0xff]   ;;  %v560_v10 = vld [vmem:[%s671_s0 + $0x8] sm:$0xff]   ;;  %v565_v13 = vld [vmem:[%s671_s0 + $0x30] sm:$0xff]  }
   0x5   :  { %519 = vmatprep.mubr.bf16.mxu0 %v559_v4  ;;  %527 = vmatprep.mubr.bf16.mxu1 %v563_v6  ;;  %v558_v9 = vld [vmem:[%s670_s1] sm:$0xff]   ;;  %v564_v11 = vld [vmem:[%s671_s0 + $0x28] sm:$0xff]   ;;  %v562_v14 = vld [vmem:[%s671_s0 + $0x18] sm:$0xff]  }
   0x6   :  { %v566_v15 = vld [vmem:[%s671_s0 + $0x38] sm:$0xff]  }
   0x7   :  { %506 = vmatpush3.bf16.msra.mxu0 %v552_v1  ;;  %544 = vmatpush3.bf16.msra.mxu1 %v552_v1 }
   0x8   :  { %507 = vmatprep.subr.bf16.mxu0 %v553_v2  ;;  %537 = vmatprep.subr.bf16.mxu1 %v553_v2 }
   0xb   :  { %508 = vmatpush3.bf16.msra.mxu0 %v553_v2  ;;  %545 = vmatpush3.bf16.msra.mxu1 %v553_v2 }
   0xc   :  { %509 = vmatprep.subr.bf16.mxu0 %v554_v3  ;;  %538 = vmatprep.subr.bf16.mxu1 %v554_v3 }
   0xf   :  { %510 = vmatpush3.bf16.msra.mxu0 %v554_v3  ;;  %546 = vmatpush3.bf16.msra.mxu1 %v554_v3 }
  0x10   :  { %511 = vmatprep.subr.bf16.mxu0 %v555_v5  ;;  %539 = vmatprep.subr.bf16.mxu1 %v555_v5 }
  0x13   :  { %512 = vmatpush3.bf16.msra.mxu0 %v555_v5  ;;  %547 = vmatpush3.bf16.msra.mxu1 %v555_v5 }
  0x14   :  { %513 = vmatprep.subr.bf16.mxu0 %v556_v7  ;;  %540 = vmatprep.subr.bf16.mxu1 %v556_v7 }
  0x17   :  { %514 = vmatpush3.bf16.msra.mxu0 %v556_v7  ;;  %548 = vmatpush3.bf16.msra.mxu1 %v556_v7 }
  0x18   :  { %515 = vmatprep.subr.bf16.mxu0 %v557_v8  ;;  %541 = vmatprep.subr.bf16.mxu1 %v557_v8 }
  0x1b   :  { %516 = vmatpush3.bf16.msra.mxu0 %v557_v8  ;;  %549 = vmatpush3.bf16.msra.mxu1 %v557_v8 }
  0x1c   :  { %517 = vmatprep.subr.bf16.mxu0 %v558_v9  ;;  %542 = vmatprep.subr.bf16.mxu1 %v558_v9 }
  0x1f   :  { %518 = vmatpush3.bf16.msra.mxu0 %v558_v9  ;;  %550 = vmatpush3.bf16.msra.mxu1 %v558_v9 }
  0x22   :  { %520 = vmatmul.mubr.bf16.vlgmr.msra.gmra.mxu0 %v560_v10  ;;  %528 = vmatmul.mubr.bf16.vlgmr.msra.gmra.mxu1 %v564_v11 }
  0x23   :  { %523 = vmatprep.mubr.bf16.mxu0 %v561_v12  ;;  %531 = vmatprep.mubr.bf16.mxu1 %v565_v13 }
  0x2a   :  { %524 = vmatmul.mubr.bf16.gmra.mxu0 %v562_v14  ;;  %532 = vmatmul.mubr.bf16.gmra.mxu1 %v566_v15 }
  0xe2   :  { %v521_v16 = vpop.f32.mrf.mxu0  ;;  %v529_v17 = vpop.f32.mrf.mxu1 }
  0xe3   :  { %v343_v33 = vmul.f32 %v521_v16, %v521_v16  ;;  %v351_v3 = vmul.f32 %v529_v17, %v529_v17 }
  0xe4   :  { %v177_v18 = vpop.f32.mrf.mxu0  ;;  %v209_v19 = vpop.f32.mrf.mxu1 }
  0xe5   :  { %v341_v24 = vmul.f32 %v177_v18, %v177_v18  ;;  %v349_v61 = vmul.f32 %v209_v19, %v209_v19 }
  0xe6   :  { %v522_v20 = vpop.f32.mrf.mxu0  ;;  %v530_v21 = vpop.f32.mrf.mxu1 }
  0xe7   :  { %v448_v22 = vpack.c.bf16 %v522_v20, %v521_v16  ;;  %v468_v23 = vpack.c.bf16 %v530_v21, %v529_v17  ;;  %v344_v38 = vmul.f32 %v522_v20, %v522_v20  ;;  %v352_v6 = vmul.f32 %v530_v21, %v530_v21 }
  0xe8   :  { %v180_v25 = vpop.f32.mrf.mxu0  ;;  %v212_v26 = vpop.f32.mrf.mxu1 }
  0xe9   :  { %480 = vst [vmem:[%s672_s2 + $0x8] sm:$0xff] %v448_v22   ;;  %v443_v27 = vpack.c.bf16 %v180_v25, %v177_v18  ;;  %v320_v28 = vadd.f32 %v180_v25, %v177_v18  ;;  %v342_v29 = vmul.f32 %v180_v25, %v180_v25  ;;  %484 = vst [vmem:[%s672_s2 + $0x28] sm:$0xff] %v468_v23  }
  0xea   :  { %v463_v30 = vpack.c.bf16 %v212_v26, %v209_v19  ;;  %v525_v31 = vpop.f32.mrf.mxu0  ;;  %v533_v32 = vpop.f32.mrf.mxu1  ;;  %v350_v1 = vmul.f32 %v212_v26, %v212_v26 }
  0xeb   :  { %444 = vst [vmem:[%s672_s2] sm:$0xff] %v443_v27   ;;  %v321_v34 = vadd.f32 %v521_v16, %v320_v28  ;;  %v357_v35 = vadd.f32 %v342_v29, %v341_v24  ;;  %v347_v55 = vmul.f32 %v525_v31, %v525_v31  ;;  %v355_v15 = vmul.f32 %v533_v32, %v533_v32 }
  0xec   :  { %483 = vst [vmem:[%s672_s2 + $0x20] sm:$0xff] %v463_v30   ;;  %v193_v36 = vpop.f32.mrf.mxu0  ;;  %v225_v37 = vpop.f32.mrf.mxu1 }
  0xed   :  { %v358_v39 = vadd.f32 %v357_v35, %v343_v33  ;;  %v322_v40 = vadd.f32 %v522_v20, %v321_v34  ;;  %v345_v44 = vmul.f32 %v193_v36, %v193_v36  ;;  %v353_v10 = vmul.f32 %v225_v37, %v225_v37 }
  0xee   :  { %v526_v41 = vpop.f32.mrf.mxu0  ;;  %v534_v42 = vpop.f32.mrf.mxu1 }
  0xef   :  { %v323_v43 = vadd.f32 %v322_v40, %v193_v36  ;;  %v359_v45 = vadd.f32 %v358_v39, %v344_v38  ;;  %v458_v46 = vpack.c.bf16 %v526_v41, %v525_v31  ;;  %v478_v48 = vpack.c.bf16 %v534_v42, %v533_v32 }
  0xf0   :  { %v196_v47 = vpop.f32.mrf.mxu0  ;;  %v228_v49 = vpop.f32.mrf.mxu1  ;;  %v348_v58 = vmul.f32 %v526_v41, %v526_v41  ;;  %v356_v20 = vmul.f32 %v534_v42, %v534_v42 }
  0xf1   :  { %v360_v50 = vadd.f32 %v359_v45, %v345_v44  ;;  %482 = vst [vmem:[%s672_s2 + $0x18] sm:$0xff] %v458_v46   ;;  %v453_v51 = vpack.c.bf16 %v196_v47, %v193_v36  ;;  %v324_v52 = vadd.f32 %v323_v43, %v196_v47  ;;  %v346_v53 = vmul.f32 %v196_v47, %v196_v47 }
  0xf2   :  { %486 = vst [vmem:[%s672_s2 + $0x38] sm:$0xff] %v478_v48   ;;  %v473_v54 = vpack.c.bf16 %v228_v49, %v225_v37  ;;  %v354_v14 = vmul.f32 %v228_v49, %v228_v49 }
  0xf3   :  { %481 = vst [vmem:[%s672_s2 + $0x10] sm:$0xff] %v453_v51   ;;  %v325_v56 = vadd.f32 %v525_v31, %v324_v52  ;;  %v361_v57 = vadd.f32 %v360_v50, %v346_v53 }
  0xf4   :  { %485 = vst [vmem:[%s672_s2 + $0x30] sm:$0xff] %v473_v54  }
  0xf5   :  { %v326_v59 = vadd.f32 %v526_v41, %v325_v56  ;;  %v362_v60 = vadd.f32 %v361_v57, %v347_v55 }
  0xf7   :  { %v363_v62 = vadd.f32 %v362_v60, %v348_v58  ;;  %v327_v63 = vadd.f32 %v326_v59, %v209_v19 }
  0xf9   :  { %v328_v0 = vadd.f32 %v327_v63, %v212_v26  ;;  %v364_v2 = vadd.f32 %v363_v62, %v349_v61 }
  0xfb   :  { %v329_v4 = vadd.f32 %v529_v17, %v328_v0  ;;  %v365_v5 = vadd.f32 %v364_v2, %v350_v1 }
  0xfd   :  { %v366_v7 = vadd.f32 %v365_v5, %v351_v3  ;;  %v330_v8 = vadd.f32 %v530_v21, %v329_v4 }
  0xff   :  { %v331_v9 = vadd.f32 %v330_v8, %v225_v37  ;;  %v367_v11 = vadd.f32 %v366_v7, %v352_v6 }
 0x101   :  { %v368_v12 = vadd.f32 %v367_v11, %v353_v10  ;;  %v332_v13 = vadd.f32 %v331_v9, %v228_v49 }
 0x103   :  { %v333_v16 = vadd.f32 %v533_v32, %v332_v13  ;;  %v369_v18 = vadd.f32 %v368_v12, %v354_v14 }
 0x105   :  { %v334_v19 = vadd.f32 %v534_v42, %v333_v16  ;;  %v370_v22 = vadd.f32 %v369_v18, %v355_v15 }
 0x107   :  { %v335_v23 = vrot.slane %v334_v19, 4  ;;  %v371_v24 = vadd.f32 %v370_v22, %v356_v20 }
 0x109   :  { %v336_v25 = vadd.f32 %v335_v23, %v334_v19  ;;  %v372_v17 = vrot.slane %v371_v24, 4 }
 0x10b   :  { %v337_v26 = vrot.slane %v336_v25, 2  ;;  %v373_v27 = vadd.f32 %v372_v17, %v371_v24 }
 0x10d   :  { %v338_v28 = vadd.f32 %v337_v26, %v336_v25  ;;  %v374_v21 = vrot.slane %v373_v27, 2 }
 0x10f   :  { %v339_v29 = vrot.slane %v338_v28, 1  ;;  %v375_v30 = vadd.f32 %v374_v21, %v373_v27 }
 0x111   :  { %v340_v31 = vadd.f32 %v339_v29, %v338_v28  ;;  %v376_v33 = vrot.slane %v375_v30, 1 }
 0x113   :  { %v377_v34 = vadd.f32 %v376_v33, %v375_v30  ;;  %378 = vst [vmem:[%s673_s3] sm:$0xff] %v340_v31 }
 0x115   :  { %379 = vst [vmem:[%s674_s4] sm:$0xff] %v377_v34 }

// kernel: resnet_block_pallas.7
= control target key start
LH: loop header
LB: loop body
LE: loop exit
PB: predicated region body
PF: predicated region fallthrough
CT: control target
= control target key end

     0   :  { %s795_s0 = inlined_call_operand.vmem [shape: bf16[128,128], index: 0, kind: input, shape index: {}]   ;;  %s796_s1 = inlined_call_operand.vmem [shape: f32[1,128], index: 1, kind: input, shape index: {}]   ;;  %s797_s2 = inlined_call_operand.vmem [shape: f32[1,128], index: 2, kind: input, shape index: {}]   ;;  %s798_s3 = inlined_call_operand.vmem [shape: bf16[128,256], index: 3, kind: input, shape index: {}]   ;;  %s799_s4 = inlined_call_operand.vmem [shape: f32[1,128], index: 4, kind: input, shape index: {}]   ;;  %s800_s5 = inlined_call_operand.vmem [shape: f32[1,128], index: 5, kind: input, shape index: {}]   ;;  %s801_s6 = inlined_call_operand.vmem [shape: bf16[128,128], index: 6, kind: output, shape index: {}]  }
   0x1   :  { %v403_v0 = vld [vmem:[%s798_s3 + $0x4] sm:$0xf]  ;;  %v404_v1 = vld [vmem:[%s798_s3 + $0xc] sm:$0xf]  ;;  %v405_v2 = vld [vmem:[%s798_s3 + $0x14] sm:$0xf] }
   0x2   :  { %37 = vst [vmem:[#allocation2] sm:$0xf] %v403_v0  ;;  %39 = vst [vmem:[#allocation2 + $0x4] sm:$0xf] %v404_v1  ;;  %v406_v3 = vld [vmem:[%s798_s3 + $0x1c] sm:$0xf] }
   0x3   :  { %41 = vst [vmem:[#allocation2 + $0x8] sm:$0xf] %v405_v2  ;;  %v407_v4 = vld [vmem:[%s798_s3 + $0x24] sm:$0xf]  ;;  %v408_v5 = vld [vmem:[%s798_s3 + $0x2c] sm:$0xf] }
   0x4   :  { %43 = vst [vmem:[#allocation2 + $0xc] sm:$0xf] %v406_v3  ;;  %45 = vst [vmem:[#allocation2 + $0x10] sm:$0xf] %v407_v4  ;;  %v409_v6 = vld [vmem:[%s798_s3 + $0x34] sm:$0xf] }
   0x5   :  { %47 = vst [vmem:[#allocation2 + $0x14] sm:$0xf] %v408_v5  ;;  %v410_v7 = vld [vmem:[%s798_s3 + $0x3c] sm:$0xf]  ;;  %v411_v8 = vld [vmem:[%s798_s3 + $0x44] sm:$0xf] }
   0x6   :  { %49 = vst [vmem:[#allocation2 + $0x18] sm:$0xf] %v409_v6  ;;  %51 = vst [vmem:[#allocation2 + $0x1c] sm:$0xf] %v410_v7  ;;  %v412_v9 = vld [vmem:[%s798_s3 + $0x4c] sm:$0xf] }
   0x7   :  { %53 = vst [vmem:[#allocation2 + $0x20] sm:$0xf] %v411_v8  ;;  %v413_v10 = vld [vmem:[%s798_s3 + $0x54] sm:$0xf]  ;;  %v414_v11 = vld [vmem:[%s798_s3 + $0x5c] sm:$0xf] }
   0x8   :  { %55 = vst [vmem:[#allocation2 + $0x24] sm:$0xf] %v412_v9  ;;  %57 = vst [vmem:[#allocation2 + $0x28] sm:$0xf] %v413_v10  ;;  %v415_v12 = vld [vmem:[%s798_s3 + $0x64] sm:$0xf] }
   0x9   :  { %59 = vst [vmem:[#allocation2 + $0x2c] sm:$0xf] %v414_v11  ;;  %v416_v13 = vld [vmem:[%s798_s3 + $0x6c] sm:$0xf]  ;;  %v417_v14 = vld [vmem:[%s798_s3 + $0x74] sm:$0xf] }
   0xa   :  { %61 = vst [vmem:[#allocation2 + $0x30] sm:$0xf] %v415_v12  ;;  %63 = vst [vmem:[#allocation2 + $0x34] sm:$0xf] %v416_v13  ;;  %v418_v15 = vld [vmem:[%s798_s3 + $0x7c] sm:$0xf] }
   0xb   :  { %65 = vst [vmem:[#allocation2 + $0x38] sm:$0xf] %v417_v14  ;;  %v456_v16 = vld [vmem:[%s795_s0] sm:$0xff]   ;;  %67 = vst [vmem:[#allocation2 + $0x3c] sm:$0xf] %v418_v15  ;;  %v559_v21 = vld [vmem:[%s795_s0 + $0x8] sm:$0xff]  }
   0xc   :  { %v669_v17 = vld [vmem:[%s796_s1] ss:$0 sm:$0xff]  ;;  %v457_v18 = vunpack.c.l.bf16 %v456_v16  ;;  %v458_v19 = vunpack.c.h.bf16 %v456_v16  ;;  %v560_v22 = vld [vmem:[%s795_s0 + $0x10] sm:$0xff]   ;;  %v461_v27 = vunpack.c.l.bf16 %v559_v21  ;;  %v462_v28 = vunpack.c.h.bf16 %v559_v21  ;;  %v566_v31 = vld [vmem:[#allocation2 + $0x8] sm:$0xff]  }
   0xd   :  { %v674_v20 = vld [vmem:[%s797_s2] ss:$0 sm:$0xff]  ;;  %v465_v32 = vunpack.c.l.bf16 %v560_v22  ;;  %v466_v33 = vunpack.c.h.bf16 %v560_v22  ;;  %v567_v34 = vld [vmem:[#allocation2 + $0x10] sm:$0xff]   ;;  %v493_v38 = vunpack.c.l.bf16 %v566_v31  ;;  %v494_v39 = vunpack.c.h.bf16 %v566_v31  ;;  %v561_v60 = vld [vmem:[%s795_s0 + $0x18] sm:$0xff]  }
   0xe   :  { %v488_v23 = vld [vmem:[#allocation2] sm:$0xff]   ;;  %v198_v24 = vmul.f32 %v457_v18, %v669_v17  ;;  %v199_v25 = vmul.f32 %v458_v19, %v669_v17  ;;  %v200_v42 = vmul.f32 %v461_v27, %v669_v17  ;;  %v201_v43 = vmul.f32 %v462_v28, %v669_v17  ;;  %v568_v1 = vld [vmem:[#allocation2 + $0x18] sm:$0xff]   ;;  %v563_v27 = vld [vmem:[%s795_s0 + $0x28] sm:$0xff]  }
   0xf   :  { %v687_v26 = vld [vmem:[%s799_s4] ss:$0 sm:$0xff]  ;;  %v489_v29 = vunpack.c.l.bf16 %v488_v23  ;;  %v490_v30 = vunpack.c.h.bf16 %v488_v23  ;;  %v497_v46 = vunpack.c.l.bf16 %v567_v34  ;;  %v498_v47 = vunpack.c.h.bf16 %v567_v34 }
  0x10   :  { %v221_v35 = vadd.f32 %v674_v20, %v198_v24  ;;  %v222_v36 = vadd.f32 %v674_v20, %v199_v25  ;;  %v694_v37 = vld [vmem:[%s800_s5] ss:$0 sm:$0xff]  ;;  %v246_v44 = vmul.f32 %v493_v38, %v687_v26  ;;  %v247_v45 = vmul.f32 %v494_v39, %v687_v26 }
  0x11   :  { %v244_v40 = vmul.f32 %v489_v29, %v687_v26  ;;  %v245_v41 = vmul.f32 %v490_v30, %v687_v26  ;;  %v223_v50 = vadd.f32 %v674_v20, %v200_v42  ;;  %v224_v51 = vadd.f32 %v674_v20, %v201_v43  ;;  %v562_v10 = vld [vmem:[%s795_s0 + $0x20] sm:$0xff]  }
  0x12   :  { %v269_v52 = vadd.f32 %v694_v37, %v246_v44  ;;  %v270_v53 = vadd.f32 %v694_v37, %v247_v45  ;;  %v202_v54 = vmul.f32 %v465_v32, %v669_v17  ;;  %v203_v55 = vmul.f32 %v466_v33, %v669_v17  ;;  %v569_v21 = vld [vmem:[#allocation2 + $0x20] sm:$0xff]  }
  0x13   :  { %v267_v48 = vadd.f32 %v694_v37, %v244_v40  ;;  %v268_v49 = vadd.f32 %v694_v37, %v245_v41  ;;  %v248_v58 = vmul.f32 %v497_v46, %v687_v26  ;;  %v249_v59 = vmul.f32 %v498_v47, %v687_v26 }
  0x14   :  { %v285_v61 = vadd.f32 %v269_v52, %v223_v50  ;;  %v286_v62 = vadd.f32 %v270_v53, %v224_v51  ;;  %v225_v63 = vadd.f32 %v674_v20, %v202_v54  ;;  %v226_v0 = vadd.f32 %v674_v20, %v203_v55  ;;  %v564_v50 = vld [vmem:[%s795_s0 + $0x30] sm:$0xff]  }
  0x15   :  { %v283_v56 = vadd.f32 %v267_v48, %v221_v35  ;;  %v284_v57 = vadd.f32 %v268_v49, %v222_v36  ;;  %v271_v4 = vadd.f32 %v694_v37, %v248_v58  ;;  %v272_v5 = vadd.f32 %v694_v37, %v249_v59  ;;  %v570_v36 = vld [vmem:[#allocation2 + $0x28] sm:$0xff]  }
  0x16   :  { %v301_v6 = vmax.f32 %v285_v61, 0.0  ;;  %v302_v7 = vmax.f32 %v286_v62, 0.0  ;;  %v469_v8 = vunpack.c.l.bf16 %v561_v60  ;;  %v470_v9 = vunpack.c.h.bf16 %v561_v60 }
  0x17   :  { %v299_v2 = vmax.f32 %v283_v56, 0.0  ;;  %v300_v3 = vmax.f32 %v284_v57, 0.0  ;;  %v287_v12 = vadd.f32 %v271_v4, %v225_v63  ;;  %v288_v13 = vadd.f32 %v272_v5, %v226_v0  ;;  %v571_v63 = vld [vmem:[#allocation2 + $0x30] sm:$0xff]   ;;  %v565_v4 = vld [vmem:[%s795_s0 + $0x38] sm:$0xff]  }
  0x18   :  { %v501_v14 = vunpack.c.l.bf16 %v568_v1  ;;  %v527_v15 = vpack.c.bf16 %v302_v7, %v301_v6  ;;  %v502_v16 = vunpack.c.h.bf16 %v568_v1  ;;  %v204_v18 = vmul.f32 %v469_v8, %v669_v17 }
  0x19   :  { %v522_v11 = vpack.c.bf16 %v300_v3, %v299_v2  ;;  %v205_v19 = vmul.f32 %v470_v9, %v669_v17  ;;  %v303_v22 = vmax.f32 %v287_v12, 0.0  ;;  %v304_v23 = vmax.f32 %v288_v13, 0.0  ;;  %v572_v13 = vld [vmem:[#allocation2 + $0x38] sm:$0xff]  }
  0x1a   :  { %v250_v24 = vmul.f32 %v501_v14, %v687_v26  ;;  %v473_v25 = vunpack.c.l.bf16 %v562_v10  ;;  %573 = vst [vmem:[%s801_s6 + $0x8] sm:$0xff] %v527_v15   ;;  %v227_v28 = vadd.f32 %v674_v20, %v204_v18  ;;  %v251_v30 = vmul.f32 %v502_v16, %v687_v26 }
  0x1b   :  { %523 = vst [vmem:[%s801_s6] sm:$0xff] %v522_v11   ;;  %v228_v29 = vadd.f32 %v674_v20, %v205_v19  ;;  %v474_v31 = vunpack.c.h.bf16 %v562_v10  ;;  %v532_v32 = vpack.c.bf16 %v304_v23, %v303_v22  ;;  %v505_v34 = vunpack.c.l.bf16 %v569_v21 }
  0x1c   :  { %v273_v33 = vadd.f32 %v694_v37, %v250_v24  ;;  %v506_v35 = vunpack.c.h.bf16 %v569_v21  ;;  %v274_v38 = vadd.f32 %v694_v37, %v251_v30  ;;  %v206_v39 = vmul.f32 %v473_v25, %v669_v17 }
  0x1d   :  { %v207_v40 = vmul.f32 %v474_v31, %v669_v17  ;;  %v477_v41 = vunpack.c.l.bf16 %v563_v27  ;;  %574 = vst [vmem:[%s801_s6 + $0x10] sm:$0xff] %v532_v32   ;;  %v252_v43 = vmul.f32 %v505_v34, %v687_v26  ;;  %v478_v45 = vunpack.c.h.bf16 %v563_v27 }
  0x1e   :  { %v289_v42 = vadd.f32 %v273_v33, %v227_v28  ;;  %v253_v44 = vmul.f32 %v506_v35, %v687_v26  ;;  %v290_v46 = vadd.f32 %v274_v38, %v228_v29  ;;  %v229_v47 = vadd.f32 %v674_v20, %v206_v39 }
  0x1f   :  { %v230_v48 = vadd.f32 %v674_v20, %v207_v40  ;;  %v509_v49 = vunpack.c.l.bf16 %v570_v36  ;;  %v275_v52 = vadd.f32 %v694_v37, %v252_v43  ;;  %v510_v54 = vunpack.c.h.bf16 %v570_v36 }
  0x20   :  { %v305_v51 = vmax.f32 %v289_v42, 0.0  ;;  %v276_v53 = vadd.f32 %v694_v37, %v253_v44  ;;  %v306_v55 = vmax.f32 %v290_v46, 0.0  ;;  %v208_v56 = vmul.f32 %v477_v41, %v669_v17 }
  0x21   :  { %v209_v57 = vmul.f32 %v478_v45, %v669_v17  ;;  %v254_v58 = vmul.f32 %v509_v49, %v687_v26  ;;  %v291_v59 = vadd.f32 %v275_v52, %v229_v47  ;;  %v255_v61 = vmul.f32 %v510_v54, %v687_v26 }
  0x22   :  { %v292_v60 = vadd.f32 %v276_v53, %v230_v48  ;;  %v481_v62 = vunpack.c.l.bf16 %v564_v50  ;;  %v537_v0 = vpack.c.bf16 %v306_v55, %v305_v51  ;;  %v231_v1 = vadd.f32 %v674_v20, %v208_v56 }
  0x23   :  { %v232_v2 = vadd.f32 %v674_v20, %v209_v57  ;;  %v277_v3 = vadd.f32 %v694_v37, %v254_v58  ;;  %v307_v5 = vmax.f32 %v291_v59, 0.0  ;;  %v278_v7 = vadd.f32 %v694_v37, %v255_v61 }
  0x24   :  { %v308_v6 = vmax.f32 %v292_v60, 0.0  ;;  %v482_v8 = vunpack.c.h.bf16 %v564_v50  ;;  %575 = vst [vmem:[%s801_s6 + $0x18] sm:$0xff] %v537_v0   ;;  %v513_v10 = vunpack.c.l.bf16 %v571_v63  ;;  %v514_v11 = vunpack.c.h.bf16 %v571_v63 }
  0x25   :  { %v293_v9 = vadd.f32 %v277_v3, %v231_v1  ;;  %v210_v12 = vmul.f32 %v481_v62, %v669_v17  ;;  %v294_v15 = vadd.f32 %v278_v7, %v232_v2  ;;  %v485_v18 = vunpack.c.l.bf16 %v565_v4 }
  0x26   :  { %v542_v14 = vpack.c.bf16 %v308_v6, %v307_v5  ;;  %v211_v16 = vmul.f32 %v482_v8, %v669_v17  ;;  %v256_v22 = vmul.f32 %v513_v10, %v687_v26  ;;  %v257_v23 = vmul.f32 %v514_v11, %v687_v26 }
  0x27   :  { %v309_v19 = vmax.f32 %v293_v9, 0.0  ;;  %v233_v21 = vadd.f32 %v674_v20, %v210_v12  ;;  %v310_v24 = vmax.f32 %v294_v15, 0.0  ;;  %v486_v27 = vunpack.c.h.bf16 %v565_v4 }
  0x28   :  { %576 = vst [vmem:[%s801_s6 + $0x20] sm:$0xff] %v542_v14   ;;  %v234_v25 = vadd.f32 %v674_v20, %v211_v16  ;;  %v517_v28 = vunpack.c.l.bf16 %v572_v13  ;;  %v279_v29 = vadd.f32 %v694_v37, %v256_v22  ;;  %v280_v30 = vadd.f32 %v694_v37, %v257_v23 }
  0x29   :  { %v518_v31 = vunpack.c.h.bf16 %v572_v13  ;;  %v212_v32 = vmul.f32 %v485_v18, %v669_v17  ;;  %v547_v33 = vpack.c.bf16 %v310_v24, %v309_v19  ;;  %v213_v34 = vmul.f32 %v486_v27, %v669_v17 }
  0x2a   :  { %v258_v35 = vmul.f32 %v517_v28, %v687_v26  ;;  %v295_v36 = vadd.f32 %v279_v29, %v233_v21  ;;  %v296_v38 = vadd.f32 %v280_v30, %v234_v25 }
  0x2b   :  { %v235_v39 = vadd.f32 %v674_v20, %v212_v32  ;;  %v259_v40 = vmul.f32 %v518_v31, %v687_v26  ;;  %577 = vst [vmem:[%s801_s6 + $0x28] sm:$0xff] %v547_v33   ;;  %v236_v41 = vadd.f32 %v674_v20, %v213_v34 }
  0x2c   :  { %v281_v42 = vadd.f32 %v694_v37, %v258_v35  ;;  %v311_v43 = vmax.f32 %v295_v36, 0.0  ;;  %v312_v44 = vmax.f32 %v296_v38, 0.0 }
  0x2d   :  { %v282_v17 = vadd.f32 %v694_v37, %v259_v40 }
  0x2e   :  { %v297_v45 = vadd.f32 %v281_v42, %v235_v39  ;;  %v552_v46 = vpack.c.bf16 %v312_v44, %v311_v43 }
  0x2f   :  { %v298_v47 = vadd.f32 %v282_v17, %v236_v41 }
  0x30   :  { %v313_v48 = vmax.f32 %v297_v45, 0.0  ;;  %578 = vst [vmem:[%s801_s6 + $0x30] sm:$0xff] %v552_v46  }
  0x31   :  { %v314_v26 = vmax.f32 %v298_v47, 0.0 }
  0x33   :  { %v557_v49 = vpack.c.bf16 %v314_v26, %v313_v48 }
  0x35   :  { %579 = vst [vmem:[%s801_s6 + $0x38] sm:$0xff] %v557_v49  }

</bundles_post_ra>
